<compile_context>
chip_gen: v5e
topology: v5e:2x2
jax: 0.10.0
libtpu: 0.0.40
codegen_flags: <defaults>
</compile_context>

<pallas_src>
import math

import jax
import jax.numpy as jnp
from jax import lax
from jax.experimental import pallas as pl
from jax.experimental.pallas import tpu as pltpu

EPS = 1e-6        # module-level EPS in the reference
BN_EPS = 1e-5     # nn.BatchNorm2d default eps
NEG_SLOPE = 0.2


def _vn_kernel(x_ref, a_ref, b_ref, w_ref, gamma_ref, beta_ref, o_ref):
    # x_ref:     [3, Cin, P]
    # a_ref:     [Co, 2*Cin]   (VNReflectionLinear.A weight)
    # b_ref:     [Co, 2*Cin]   (VNReflectionLinear.B weight)
    # w_ref:     [Co, Co]      (VNLeakyReLU.map_to_dir weight)
    # gamma_ref: [Co, 1], beta_ref: [Co, 1]   (BatchNorm2d affine params)
    # o_ref:     [3, Co, C2*P] lane-flattened output, q = j*P + p
    f32 = jnp.float32
    x = x_ref[...]
    A = a_ref[...]
    Bw = b_ref[...]
    W = w_ref[...]
    gamma = gamma_ref[...]                        # [Co, 1]
    beta = beta_ref[...]                          # [Co, 1]

    P = x.shape[2]
    Co, C2 = A.shape
    Q = C2 * P

    x0, x1, x2 = x[0], x[1], x[2]                 # [Cin, P] each

    # ---------------- VNReflectionLinear ----------------
    m0 = jnp.mean(x0, axis=0, keepdims=True)      # [1, P]
    m1 = jnp.mean(x1, axis=0, keepdims=True)
    m2 = jnp.mean(x2, axis=0, keepdims=True)

    xc0 = x1 * m2 - x2 * m1                       # cross(x, x_mean) over the 3-axis
    xc1 = x2 * m0 - x0 * m2
    xc2 = x0 * m1 - x1 * m0

    cat0 = jnp.concatenate([x0, xc0], axis=0)     # [C2, P]
    cat1 = jnp.concatenate([x1, xc1], axis=0)
    cat2 = jnp.concatenate([x2, xc2], axis=0)

    # un = roll(x, 1, dims=channels): single XLU sublane rotation per component.
    un0 = pltpu.roll(cat0, shift=1, axis=0)
    un1 = pltpu.roll(cat1, shift=1, axis=0)
    un2 = pltpu.roll(cat2, shift=1, axis=0)

    cr0 = un1 * cat2 - un2 * cat1                 # cross(un, x)
    cr1 = un2 * cat0 - un0 * cat2
    cr2 = un0 * cat1 - un1 * cat0

    # 1 / sqrt(|un|^2 + EPS): EUP rsqrt instead of sqrt-then-divide.
    inv_un = lax.rsqrt(un0 * un0 + un1 * un1 + un2 * un2 + EPS)      # [C2, P]

    # Batch the A / B matmuls over the 3 vector components: 2 MXU calls instead of 6.
    cat_all = jnp.concatenate([cat0, cat1, cat2], axis=1)            # [C2, 3P]
    cr_all = jnp.concatenate([cr0, cr1, cr2], axis=1)                # [C2, 3P]
    avn_all = jnp.dot(A, cat_all, preferred_element_type=f32)        # [Co, 3P]
    bc_all = jnp.dot(Bw, cr_all, preferred_element_type=f32)         # [Co, 3P]
    avn = [avn_all[:, c * P:(c + 1) * P] for c in range(3)]          # 3 x [Co, P]
    bc = [bc_all[:, c * P:(c + 1) * P] for c in range(3)]            # 3 x [Co, P]

    # Materialize 1/||un_j|| broadcast to [C2, Co, P].  Source is a single vreg; each
    # step is a plain 2D sublane broadcast + a leading-axis stack (this is NOT the
    # old [Co,P]-slab stacking of the big per-j tensors).
    invf = jnp.stack(
        [jnp.broadcast_to(inv_un[j:j + 1, :], (Co, P)) for j in range(C2)], axis=0)
    invf2 = invf * invf

    # (batch==1 torch broadcast)  o1[c][j, o, p] = avn[c][o, p] + bc[c][o, p] * inv_un[j, p]
    o1 = [avn[c][None, :, :] + bc[c][None, :, :] * invf for c in range(3)]   # [C2, Co, P]

    # ---------------- VNBatchNorm (mode='norm', BatchNorm2d, training stats) ----------------
    # rank-1 structure: |o1|^2 = Saa + 2*Sab*inv + Sbb*inv^2  (Saa/Sab/Sbb are [Co, P])
    saa = avn[0] * avn[0] + avn[1] * avn[1] + avn[2] * avn[2]
    sab2 = 2.0 * (avn[0] * bc[0] + avn[1] * bc[1] + avn[2] * bc[2])
    sbb = bc[0] * bc[0] + bc[1] * bc[1] + bc[2] * bc[2]
    nrm_sq = (saa[None, :, :] + sab2[None, :, :] * invf
              + sbb[None, :, :] * invf2)                             # [C2, Co, P]
    nrm_sq = jnp.maximum(nrm_sq, 0.0) + EPS                          # guard fp cancellation
    nrm = jnp.sqrt(nrm_sq)                                           # [C2, Co, P]

    # One-pass batch statistics (sum + sum-of-squares) over (C2, P) per channel Co.
    count = C2 * P
    s1 = jnp.sum(jnp.sum(nrm, axis=2, keepdims=True), axis=0, keepdims=True)      # [1,Co,1]
    s2 = jnp.sum(jnp.sum(nrm_sq, axis=2, keepdims=True), axis=0, keepdims=True)   # [1,Co,1]
    mu = s1 * (1.0 / count)
    var = s2 * (1.0 / count) - mu * mu            # biased variance (training-mode BN)
    inv_std = lax.rsqrt(var + BN_EPS)             # [1, Co, 1]
    bn_scale = gamma[None, :, :] * inv_std
    bn_shift = beta[None, :, :] - mu * bn_scale
    # TODO(synk): BatchNorm running_mean/running_var buffer updates (a training-time
    # side effect) are not materialized; they do not affect the forward output.

    nrm_bn = nrm * bn_scale + bn_shift
    scale = nrm_bn / (nrm + EPS)                  # exact division to match reference numerics
    o2 = [o1[c] * scale for c in range(3)]        # [C2, Co, P]

    # ---------------- VNLeakyReLU ----------------
    # Lane-flatten (j, p) -> q so map_to_dir is ONE [Co,Co] x [Co, 3*C2*P] matmul
    # instead of 3*C2 tiny MXU calls, and the final store is lane-dense.
    o2f = [jnp.concatenate([o2[c][j] for j in range(C2)], axis=1) for c in range(3)]  # [Co, Q]
    d_all = jnp.dot(W, jnp.concatenate(o2f, axis=1), preferred_element_type=f32)      # [Co, 3Q]
    df = [d_all[:, c * Q:(c + 1) * Q] for c in range(3)]                              # 3 x [Co, Q]

    dotprod = o2f[0] * df[0] + o2f[1] * df[1] + o2f[2] * df[2]       # [Co, Q]
    d_norm_sq = df[0] * df[0] + df[1] * df[1] + df[2] * df[2]
    # algebraic simplification of the reference:  y = x          if dot >= 0
    #                                             y = x - (1-slope)*dot/(|d|^2+EPS)*d  else
    g = jnp.where(dotprod >= 0, 0.0,
                  (1.0 - NEG_SLOPE) * dotprod / (d_norm_sq + EPS))

    o_ref[0] = o2f[0] - g * df[0]
    o_ref[1] = o2f[1] - g * df[1]
    o_ref[2] = o2f[2] - g * df[2]


def vn_reflection_linear_and_leaky_relu(x, A, B, W, gamma, beta):
    """x: [1, Cin, 3, N, K] (torch layout; batch must be 1 -- see note at top).
    Returns [2*Cin, Co, 3, N, K], exactly what the PyTorch module yields for B=1."""
    Bsz, Cin, three, N, K = x.shape
    assert Bsz == 1 and three == 3, "reference broadcast only type-checks for batch==1"
    Co, C2 = A.shape
    assert C2 == 2 * Cin
    P = N * K
    Q = C2 * P

    # glue: [1, Cin, 3, N, K] -> [3, Cin, P]
    x3 = jnp.transpose(x[0], (1, 0, 2, 3)).reshape(3, Cin, P).astype(jnp.float32)

    vmem = pl.BlockSpec(memory_space=pltpu.MemorySpace.VMEM)
    # TODO(synk): for production sizes (P >> 128) add a grid over the P/lane axis with a
    # two-phase BatchNorm reduction (stats pass + normalize pass) so the kernel pipelines
    # and fits v7x's 64 MiB VMEM; unnecessary at these toy shapes (everything fits VMEM).
    out = pl.pallas_call(
        _vn_kernel,
        out_shape=jax.ShapeDtypeStruct((3, Co, Q), jnp.float32),
        in_specs=[vmem] * 6,
        out_specs=vmem,
    )(x3, A.astype(jnp.float32), B.astype(jnp.float32), W.astype(jnp.float32),
      gamma.reshape(Co, 1).astype(jnp.float32), beta.reshape(Co, 1).astype(jnp.float32))

    # glue: [3, Co, C2*P] -> [C2, Co, 3, N, K]  (module's output layout; relayout done by
    # XLA on the small HBM result -- drop if the consumer accepts the kernel-native layout).
    return jnp.transpose(out.reshape(3, Co, C2, N, K), (2, 1, 0, 3, 4))


def _reference_forward(x, A, B, W, gamma, beta):
    """Literal jnp transcription of the PyTorch module (batch == 1), for validation."""
    # VNReflectionLinear
    xm = jnp.broadcast_to(jnp.mean(x, axis=1, keepdims=True), x.shape)
    xcat = jnp.concatenate([x, jnp.cross(x, xm, axis=2)], axis=1)       # [1, C2, 3, N, K]
    avn = jnp.einsum('oc,bcdnk->bodnk', A, xcat)                        # [1, Co, 3, N, K]
    un = jnp.roll(xcat, 1, axis=1)
    cross = jnp.cross(un, xcat, axis=2)
    norm = jnp.sqrt(jnp.sum(un * un, axis=2, keepdims=True) + EPS)      # [1, C2, 1, N, K]
    div = jnp.transpose(cross, (2, 0, 1, 3, 4)) / norm                  # [3, C2, C2, N, K]
    cross = jnp.transpose(div, (1, 2, 0, 3, 4))                         # [C2, C2, 3, N, K]
    bcross = jnp.einsum('oc,jcdnk->jodnk', B, cross)                    # [C2, Co, 3, N, K]
    out1 = avn + bcross
    # VNBatchNorm('norm'), BatchNorm2d in training mode (batch stats, biased var)
    n2 = jnp.sqrt(jnp.sum(out1 * out1, axis=2) + EPS)                   # [C2, Co, N, K]
    mu = jnp.mean(n2, axis=(0, 2, 3))
    var = jnp.var(n2, axis=(0, 2, 3))
    n2_bn = (n2 - mu[None, :, None, None]) / jnp.sqrt(var + BN_EPS)[None, :, None, None]
    n2_bn = n2_bn * gamma[None, :, None, None] + beta[None, :, None, None]
    out2 = out1 / (n2[:, :, None] + EPS) * n2_bn[:, :, None]
    # VNLeakyReLU
    d = jnp.einsum('oc,jcdnk->jodnk', W, out2)
    dot = jnp.sum(out2 * d, axis=2, keepdims=True)
    dnsq = jnp.sum(d * d, axis=2, keepdims=True)
    mask = (dot >= 0).astype(out2.dtype)
    return (NEG_SLOPE * out2 + (1.0 - NEG_SLOPE)
            * (mask * out2 + (1.0 - mask) * (out2 - dot / (dnsq + EPS) * d)))


if __name__ == "__main__":
    # small, module-consistent shapes
    Cin, Co, N, K = 4, 8, 8, 16          # x: [1, 4, 3, 8, 16]
    key = jax.random.PRNGKey(0)
    kx, ka, kb, kw = jax.random.split(key, 4)

    x = jax.random.normal(kx, (1, Cin, 3, N, K), dtype=jnp.float32)

    # deterministic parameter init (nn.Linear-style uniform bounds)
    bound_ab = 1.0 / math.sqrt(2 * Cin)
    A = jax.random.uniform(ka, (Co, 2 * Cin), minval=-bound_ab, maxval=bound_ab,
                           dtype=jnp.float32)
    B = jax.random.uniform(kb, (Co, 2 * Cin), minval=-bound_ab, maxval=bound_ab,
                           dtype=jnp.float32)
    bound_w = 1.0 / math.sqrt(Co)
    W = jax.random.uniform(kw, (Co, Co), minval=-bound_w, maxval=bound_w,
                           dtype=jnp.float32)
    gamma = jnp.ones((Co,), jnp.float32)   # BatchNorm2d default affine init
    beta = jnp.zeros((Co,), jnp.float32)

    y = vn_reflection_linear_and_leaky_relu(x, A, B, W, gamma, beta)
    y = jax.block_until_ready(y)

    assert y.shape == (2 * Cin, Co, 3, N, K), y.shape
    assert bool(jnp.all(jnp.isfinite(y)))

    y_ref = _reference_forward(x, A, B, W, gamma, beta)
    assert bool(jnp.allclose(y, y_ref, rtol=1e-2, atol=1e-2)), \
        float(jnp.max(jnp.abs(y - y_ref)))

    print("KERNEL_OK")
</pallas_src>

<mosaic_0001>
module attributes {stable_mosaic.version = 11 : i64} {
  func.func @_vn_kernel(%arg0: memref<3x4x128xf32, #tpu.memory_space<vmem>>, %arg1: memref<8x8xf32, #tpu.memory_space<vmem>>, %arg2: memref<8x8xf32, #tpu.memory_space<vmem>>, %arg3: memref<8x8xf32, #tpu.memory_space<vmem>>, %arg4: memref<8x1xf32, #tpu.memory_space<vmem>>, %arg5: memref<8x1xf32, #tpu.memory_space<vmem>>, %arg6: memref<3x8x1024xf32, #tpu.memory_space<vmem>>) attributes {dimension_semantics = [], scalar_prefetch = 0 : i64, scratch_operands = 0 : i64, tpu.core_type = #tpu.core_type<tc>} {
    %c0 = arith.constant 0 : index
    %c0_0 = arith.constant 0 : index
    %c0_1 = arith.constant 0 : index
    %0 = vector.load %arg0[%c0, %c0_0, %c0_1] : memref<3x4x128xf32, #tpu.memory_space<vmem>>, vector<3x4x128xf32>
    %c0_2 = arith.constant 0 : index
    %c0_3 = arith.constant 0 : index
    %1 = vector.load %arg1[%c0_2, %c0_3] : memref<8x8xf32, #tpu.memory_space<vmem>>, vector<8x8xf32>
    %c0_4 = arith.constant 0 : index
    %c0_5 = arith.constant 0 : index
    %2 = vector.load %arg2[%c0_4, %c0_5] : memref<8x8xf32, #tpu.memory_space<vmem>>, vector<8x8xf32>
    %c0_6 = arith.constant 0 : index
    %c0_7 = arith.constant 0 : index
    %3 = vector.load %arg3[%c0_6, %c0_7] : memref<8x8xf32, #tpu.memory_space<vmem>>, vector<8x8xf32>
    %c0_8 = arith.constant 0 : index
    %c0_9 = arith.constant 0 : index
    %4 = vector.load %arg4[%c0_8, %c0_9] : memref<8x1xf32, #tpu.memory_space<vmem>>, vector<8x1xf32>
    %c0_10 = arith.constant 0 : index
    %c0_11 = arith.constant 0 : index
    %5 = vector.load %arg5[%c0_10, %c0_11] : memref<8x1xf32, #tpu.memory_space<vmem>>, vector<8x1xf32>
    %6 = vector.extract_strided_slice %0 {offsets = [0, 0, 0], sizes = [1, 4, 128], strides = [1, 1, 1]} : vector<3x4x128xf32> to vector<1x4x128xf32>
    %7 = vector.shape_cast %6 : vector<1x4x128xf32> to vector<4x128xf32>
    %8 = vector.extract_strided_slice %0 {offsets = [1, 0, 0], sizes = [1, 4, 128], strides = [1, 1, 1]} : vector<3x4x128xf32> to vector<1x4x128xf32>
    %9 = vector.shape_cast %8 : vector<1x4x128xf32> to vector<4x128xf32>
    %10 = vector.extract_strided_slice %0 {offsets = [2, 0, 0], sizes = [1, 4, 128], strides = [1, 1, 1]} : vector<3x4x128xf32> to vector<1x4x128xf32>
    %11 = vector.shape_cast %10 : vector<1x4x128xf32> to vector<4x128xf32>
    %cst = arith.constant dense<0.000000e+00> : vector<128xf32>
    %12 = vector.multi_reduction <add>, %7, %cst [0] : vector<4x128xf32> to vector<128xf32>
    %13 = vector.shape_cast %12 : vector<128xf32> to vector<1x128xf32>
    %cst_12 = arith.constant 4.000000e+00 : f32
    %14 = vector.broadcast %cst_12 : f32 to vector<1x128xf32>
    %15 = arith.divf %13, %14 : vector<1x128xf32>
    %cst_13 = arith.constant dense<0.000000e+00> : vector<128xf32>
    %16 = vector.multi_reduction <add>, %9, %cst_13 [0] : vector<4x128xf32> to vector<128xf32>
    %17 = vector.shape_cast %16 : vector<128xf32> to vector<1x128xf32>
    %cst_14 = arith.constant 4.000000e+00 : f32
    %18 = vector.broadcast %cst_14 : f32 to vector<1x128xf32>
    %19 = arith.divf %17, %18 : vector<1x128xf32>
    %cst_15 = arith.constant dense<0.000000e+00> : vector<128xf32>
    %20 = vector.multi_reduction <add>, %11, %cst_15 [0] : vector<4x128xf32> to vector<128xf32>
    %21 = vector.shape_cast %20 : vector<128xf32> to vector<1x128xf32>
    %cst_16 = arith.constant 4.000000e+00 : f32
    %22 = vector.broadcast %cst_16 : f32 to vector<1x128xf32>
    %23 = arith.divf %21, %22 : vector<1x128xf32>
    %24 = vector.broadcast %23 : vector<1x128xf32> to vector<4x128xf32>
    %25 = arith.mulf %9, %24 : vector<4x128xf32>
    %26 = vector.broadcast %19 : vector<1x128xf32> to vector<4x128xf32>
    %27 = arith.mulf %11, %26 : vector<4x128xf32>
    %28 = arith.subf %25, %27 : vector<4x128xf32>
    %29 = vector.broadcast %15 : vector<1x128xf32> to vector<4x128xf32>
    %30 = arith.mulf %11, %29 : vector<4x128xf32>
    %31 = vector.broadcast %23 : vector<1x128xf32> to vector<4x128xf32>
    %32 = arith.mulf %7, %31 : vector<4x128xf32>
    %33 = arith.subf %30, %32 : vector<4x128xf32>
    %34 = vector.broadcast %19 : vector<1x128xf32> to vector<4x128xf32>
    %35 = arith.mulf %7, %34 : vector<4x128xf32>
    %36 = vector.broadcast %15 : vector<1x128xf32> to vector<4x128xf32>
    %37 = arith.mulf %9, %36 : vector<4x128xf32>
    %38 = arith.subf %35, %37 : vector<4x128xf32>
    %39 = tpu.concatenate %7, %28 in 0 : vector<4x128xf32>, vector<4x128xf32> -> vector<8x128xf32>
    %40 = tpu.concatenate %9, %33 in 0 : vector<4x128xf32>, vector<4x128xf32> -> vector<8x128xf32>
    %41 = tpu.concatenate %11, %38 in 0 : vector<4x128xf32>, vector<4x128xf32> -> vector<8x128xf32>
    %c1_i32 = arith.constant 1 : i32
    %42 = tpu.dynamic_rotate %39 by %c1_i32 dim 0 : vector<8x128xf32>, i32 -> vector<8x128xf32>
    %c1_i32_17 = arith.constant 1 : i32
    %43 = tpu.dynamic_rotate %40 by %c1_i32_17 dim 0 : vector<8x128xf32>, i32 -> vector<8x128xf32>
    %c1_i32_18 = arith.constant 1 : i32
    %44 = tpu.dynamic_rotate %41 by %c1_i32_18 dim 0 : vector<8x128xf32>, i32 -> vector<8x128xf32>
    %45 = arith.mulf %43, %41 : vector<8x128xf32>
    %46 = arith.mulf %44, %40 : vector<8x128xf32>
    %47 = arith.subf %45, %46 : vector<8x128xf32>
    %48 = arith.mulf %44, %39 : vector<8x128xf32>
    %49 = arith.mulf %42, %41 : vector<8x128xf32>
    %50 = arith.subf %48, %49 : vector<8x128xf32>
    %51 = arith.mulf %42, %40 : vector<8x128xf32>
    %52 = arith.mulf %43, %39 : vector<8x128xf32>
    %53 = arith.subf %51, %52 : vector<8x128xf32>
    %54 = arith.mulf %42, %42 : vector<8x128xf32>
    %55 = arith.mulf %43, %43 : vector<8x128xf32>
    %56 = arith.addf %54, %55 : vector<8x128xf32>
    %57 = arith.mulf %44, %44 : vector<8x128xf32>
    %58 = arith.addf %56, %57 : vector<8x128xf32>
    %cst_19 = arith.constant 9.99999997E-7 : f32
    %59 = vector.broadcast %cst_19 : f32 to vector<8x128xf32>
    %60 = arith.addf %58, %59 : vector<8x128xf32>
    %61 = math.rsqrt %60 : vector<8x128xf32>
    %62 = tpu.concatenate %39, %40, %41 in 1 : vector<8x128xf32>, vector<8x128xf32>, vector<8x128xf32> -> vector<8x384xf32>
    %63 = tpu.concatenate %47, %50, %53 in 1 : vector<8x128xf32>, vector<8x128xf32>, vector<8x128xf32> -> vector<8x384xf32>
    %cst_20 = arith.constant dense<0.000000e+00> : vector<8x384xf32>
    %64 = tpu.matmul %1, %62, %cst_20 {dimension_numbers = #tpu.dot_dimension_numbers<[1], [0], [0], [1], [0, 0, 1, 1], [], []>} : vector<8x8xf32>, vector<8x384xf32>, vector<8x384xf32> -> vector<8x384xf32>
    %cst_21 = arith.constant dense<0.000000e+00> : vector<8x384xf32>
    %65 = tpu.matmul %2, %63, %cst_21 {dimension_numbers = #tpu.dot_dimension_numbers<[1], [0], [0], [1], [0, 0, 1, 1], [], []>} : vector<8x8xf32>, vector<8x384xf32>, vector<8x384xf32> -> vector<8x384xf32>
    %66 = vector.extract_strided_slice %64 {offsets = [0, 0], sizes = [8, 128], strides = [1, 1]} : vector<8x384xf32> to vector<8x128xf32>
    %67 = vector.extract_strided_slice %64 {offsets = [0, 128], sizes = [8, 128], strides = [1, 1]} : vector<8x384xf32> to vector<8x128xf32>
    %68 = vector.extract_strided_slice %64 {offsets = [0, 256], sizes = [8, 128], strides = [1, 1]} : vector<8x384xf32> to vector<8x128xf32>
    %69 = vector.extract_strided_slice %65 {offsets = [0, 0], sizes = [8, 128], strides = [1, 1]} : vector<8x384xf32> to vector<8x128xf32>
    %70 = vector.extract_strided_slice %65 {offsets = [0, 128], sizes = [8, 128], strides = [1, 1]} : vector<8x384xf32> to vector<8x128xf32>
    %71 = vector.extract_strided_slice %65 {offsets = [0, 256], sizes = [8, 128], strides = [1, 1]} : vector<8x384xf32> to vector<8x128xf32>
    %72 = vector.extract_strided_slice %61 {offsets = [0, 0], sizes = [1, 128], strides = [1, 1]} : vector<8x128xf32> to vector<1x128xf32>
    %73 = vector.shape_cast %72 : vector<1x128xf32> to vector<1x128xf32>
    %74 = vector.broadcast %73 : vector<1x128xf32> to vector<8x128xf32>
    %75 = vector.extract_strided_slice %61 {offsets = [1, 0], sizes = [1, 128], strides = [1, 1]} : vector<8x128xf32> to vector<1x128xf32>
    %76 = vector.shape_cast %75 : vector<1x128xf32> to vector<1x128xf32>
    %77 = vector.broadcast %76 : vector<1x128xf32> to vector<8x128xf32>
    %78 = vector.extract_strided_slice %61 {offsets = [2, 0], sizes = [1, 128], strides = [1, 1]} : vector<8x128xf32> to vector<1x128xf32>
    %79 = vector.shape_cast %78 : vector<1x128xf32> to vector<1x128xf32>
    %80 = vector.broadcast %79 : vector<1x128xf32> to vector<8x128xf32>
    %81 = vector.extract_strided_slice %61 {offsets = [3, 0], sizes = [1, 128], strides = [1, 1]} : vector<8x128xf32> to vector<1x128xf32>
    %82 = vector.shape_cast %81 : vector<1x128xf32> to vector<1x128xf32>
    %83 = vector.broadcast %82 : vector<1x128xf32> to vector<8x128xf32>
    %84 = vector.extract_strided_slice %61 {offsets = [4, 0], sizes = [1, 128], strides = [1, 1]} : vector<8x128xf32> to vector<1x128xf32>
    %85 = vector.shape_cast %84 : vector<1x128xf32> to vector<1x128xf32>
    %86 = vector.broadcast %85 : vector<1x128xf32> to vector<8x128xf32>
    %87 = vector.extract_strided_slice %61 {offsets = [5, 0], sizes = [1, 128], strides = [1, 1]} : vector<8x128xf32> to vector<1x128xf32>
    %88 = vector.shape_cast %87 : vector<1x128xf32> to vector<1x128xf32>
    %89 = vector.broadcast %88 : vector<1x128xf32> to vector<8x128xf32>
    %90 = vector.extract_strided_slice %61 {offsets = [6, 0], sizes = [1, 128], strides = [1, 1]} : vector<8x128xf32> to vector<1x128xf32>
    %91 = vector.shape_cast %90 : vector<1x128xf32> to vector<1x128xf32>
    %92 = vector.broadcast %91 : vector<1x128xf32> to vector<8x128xf32>
    %93 = vector.extract_strided_slice %61 {offsets = [7, 0], sizes = [1, 128], strides = [1, 1]} : vector<8x128xf32> to vector<1x128xf32>
    %94 = vector.shape_cast %93 : vector<1x128xf32> to vector<1x128xf32>
    %95 = vector.broadcast %94 : vector<1x128xf32> to vector<8x128xf32>
    %96 = vector.shape_cast %74 : vector<8x128xf32> to vector<1x8x128xf32>
    %97 = vector.shape_cast %77 : vector<8x128xf32> to vector<1x8x128xf32>
    %98 = vector.shape_cast %80 : vector<8x128xf32> to vector<1x8x128xf32>
    %99 = vector.shape_cast %83 : vector<8x128xf32> to vector<1x8x128xf32>
    %100 = vector.shape_cast %86 : vector<8x128xf32> to vector<1x8x128xf32>
    %101 = vector.shape_cast %89 : vector<8x128xf32> to vector<1x8x128xf32>
    %102 = vector.shape_cast %92 : vector<8x128xf32> to vector<1x8x128xf32>
    %103 = vector.shape_cast %95 : vector<8x128xf32> to vector<1x8x128xf32>
    %104 = tpu.concatenate %96, %97, %98, %99, %100, %101, %102, %103 in 0 : vector<1x8x128xf32>, vector<1x8x128xf32>, vector<1x8x128xf32>, vector<1x8x128xf32>, vector<1x8x128xf32>, vector<1x8x128xf32>, vector<1x8x128xf32>, vector<1x8x128xf32> -> vector<8x8x128xf32>
    %105 = arith.mulf %104, %104 : vector<8x8x128xf32>
    %106 = vector.shape_cast %66 : vector<8x128xf32> to vector<1x8x128xf32>
    %107 = vector.shape_cast %69 : vector<8x128xf32> to vector<1x8x128xf32>
    %108 = vector.broadcast %107 : vector<1x8x128xf32> to vector<8x8x128xf32>
    %109 = arith.mulf %108, %104 : vector<8x8x128xf32>
    %110 = vector.broadcast %106 : vector<1x8x128xf32> to vector<8x8x128xf32>
    %111 = arith.addf %110, %109 : vector<8x8x128xf32>
    %112 = vector.shape_cast %67 : vector<8x128xf32> to vector<1x8x128xf32>
    %113 = vector.shape_cast %70 : vector<8x128xf32> to vector<1x8x128xf32>
    %114 = vector.broadcast %113 : vector<1x8x128xf32> to vector<8x8x128xf32>
    %115 = arith.mulf %114, %104 : vector<8x8x128xf32>
    %116 = vector.broadcast %112 : vector<1x8x128xf32> to vector<8x8x128xf32>
    %117 = arith.addf %116, %115 : vector<8x8x128xf32>
    %118 = vector.shape_cast %68 : vector<8x128xf32> to vector<1x8x128xf32>
    %119 = vector.shape_cast %71 : vector<8x128xf32> to vector<1x8x128xf32>
    %120 = vector.broadcast %119 : vector<1x8x128xf32> to vector<8x8x128xf32>
    %121 = arith.mulf %120, %104 : vector<8x8x128xf32>
    %122 = vector.broadcast %118 : vector<1x8x128xf32> to vector<8x8x128xf32>
    %123 = arith.addf %122, %121 : vector<8x8x128xf32>
    %124 = arith.mulf %66, %66 : vector<8x128xf32>
    %125 = arith.mulf %67, %67 : vector<8x128xf32>
    %126 = arith.addf %124, %125 : vector<8x128xf32>
    %127 = arith.mulf %68, %68 : vector<8x128xf32>
    %128 = arith.addf %126, %127 : vector<8x128xf32>
    %129 = arith.mulf %66, %69 : vector<8x128xf32>
    %130 = arith.mulf %67, %70 : vector<8x128xf32>
    %131 = arith.addf %129, %130 : vector<8x128xf32>
    %132 = arith.mulf %68, %71 : vector<8x128xf32>
    %133 = arith.addf %131, %132 : vector<8x128xf32>
    %cst_22 = arith.constant 2.000000e+00 : f32
    %134 = vector.broadcast %cst_22 : f32 to vector<8x128xf32>
    %135 = arith.mulf %134, %133 : vector<8x128xf32>
    %136 = arith.mulf %69, %69 : vector<8x128xf32>
    %137 = arith.mulf %70, %70 : vector<8x128xf32>
    %138 = arith.addf %136, %137 : vector<8x128xf32>
    %139 = arith.mulf %71, %71 : vector<8x128xf32>
    %140 = arith.addf %138, %139 : vector<8x128xf32>
    %141 = vector.shape_cast %128 : vector<8x128xf32> to vector<1x8x128xf32>
    %142 = vector.shape_cast %135 : vector<8x128xf32> to vector<1x8x128xf32>
    %143 = vector.broadcast %142 : vector<1x8x128xf32> to vector<8x8x128xf32>
    %144 = arith.mulf %143, %104 : vector<8x8x128xf32>
    %145 = vector.broadcast %141 : vector<1x8x128xf32> to vector<8x8x128xf32>
    %146 = arith.addf %145, %144 : vector<8x8x128xf32>
    %147 = vector.shape_cast %140 : vector<8x128xf32> to vector<1x8x128xf32>
    %148 = vector.broadcast %147 : vector<1x8x128xf32> to vector<8x8x128xf32>
    %149 = arith.mulf %148, %105 : vector<8x8x128xf32>
    %150 = arith.addf %146, %149 : vector<8x8x128xf32>
    %cst_23 = arith.constant 0.000000e+00 : f32
    %151 = vector.broadcast %cst_23 : f32 to vector<8x8x128xf32>
    %152 = arith.maximumf %150, %151 : vector<8x8x128xf32>
    %cst_24 = arith.constant 9.99999997E-7 : f32
    %153 = vector.broadcast %cst_24 : f32 to vector<8x8x128xf32>
    %154 = arith.addf %152, %153 : vector<8x8x128xf32>
    %155 = math.sqrt %154 : vector<8x8x128xf32>
    %cst_25 = arith.constant dense<0.000000e+00> : vector<8x8xf32>
    %156 = vector.multi_reduction <add>, %155, %cst_25 [2] : vector<8x8x128xf32> to vector<8x8xf32>
    %157 = vector.shape_cast %156 : vector<8x8xf32> to vector<8x8x1xf32>
    %cst_26 = arith.constant dense<0.000000e+00> : vector<8x1xf32>
    %158 = vector.multi_reduction <add>, %157, %cst_26 [0] : vector<8x8x1xf32> to vector<8x1xf32>
    %159 = vector.shape_cast %158 : vector<8x1xf32> to vector<1x8x1xf32>
    %cst_27 = arith.constant dense<0.000000e+00> : vector<8x8xf32>
    %160 = vector.multi_reduction <add>, %154, %cst_27 [2] : vector<8x8x128xf32> to vector<8x8xf32>
    %161 = vector.shape_cast %160 : vector<8x8xf32> to vector<8x8x1xf32>
    %cst_28 = arith.constant dense<0.000000e+00> : vector<8x1xf32>
    %162 = vector.multi_reduction <add>, %161, %cst_28 [0] : vector<8x8x1xf32> to vector<8x1xf32>
    %163 = vector.shape_cast %162 : vector<8x1xf32> to vector<1x8x1xf32>
    %cst_29 = arith.constant 9.765625E-4 : f32
    %164 = vector.broadcast %cst_29 : f32 to vector<1x8x1xf32>
    %165 = arith.mulf %159, %164 : vector<1x8x1xf32>
    %cst_30 = arith.constant 9.765625E-4 : f32
    %166 = vector.broadcast %cst_30 : f32 to vector<1x8x1xf32>
    %167 = arith.mulf %163, %166 : vector<1x8x1xf32>
    %168 = arith.mulf %165, %165 : vector<1x8x1xf32>
    %169 = arith.subf %167, %168 : vector<1x8x1xf32>
    %cst_31 = arith.constant 9.99999974E-6 : f32
    %170 = vector.broadcast %cst_31 : f32 to vector<1x8x1xf32>
    %171 = arith.addf %169, %170 : vector<1x8x1xf32>
    %172 = math.rsqrt %171 : vector<1x8x1xf32>
    %173 = vector.shape_cast %4 : vector<8x1xf32> to vector<1x8x1xf32>
    %174 = arith.mulf %173, %172 : vector<1x8x1xf32>
    %175 = vector.shape_cast %5 : vector<8x1xf32> to vector<1x8x1xf32>
    %176 = arith.mulf %165, %174 : vector<1x8x1xf32>
    %177 = arith.subf %175, %176 : vector<1x8x1xf32>
    %178 = vector.broadcast %174 : vector<1x8x1xf32> to vector<8x8x128xf32>
    %179 = arith.mulf %155, %178 : vector<8x8x128xf32>
    %180 = vector.broadcast %177 : vector<1x8x1xf32> to vector<8x8x128xf32>
    %181 = arith.addf %179, %180 : vector<8x8x128xf32>
    %cst_32 = arith.constant 9.99999997E-7 : f32
    %182 = vector.broadcast %cst_32 : f32 to vector<8x8x128xf32>
    %183 = arith.addf %155, %182 : vector<8x8x128xf32>
    %184 = arith.divf %181, %183 : vector<8x8x128xf32>
    %185 = arith.mulf %111, %184 : vector<8x8x128xf32>
    %186 = arith.mulf %117, %184 : vector<8x8x128xf32>
    %187 = arith.mulf %123, %184 : vector<8x8x128xf32>
    %188 = vector.extract_strided_slice %185 {offsets = [0, 0, 0], sizes = [1, 8, 128], strides = [1, 1, 1]} : vector<8x8x128xf32> to vector<1x8x128xf32>
    %189 = vector.shape_cast %188 : vector<1x8x128xf32> to vector<8x128xf32>
    %190 = vector.extract_strided_slice %185 {offsets = [1, 0, 0], sizes = [1, 8, 128], strides = [1, 1, 1]} : vector<8x8x128xf32> to vector<1x8x128xf32>
    %191 = vector.shape_cast %190 : vector<1x8x128xf32> to vector<8x128xf32>
    %192 = vector.extract_strided_slice %185 {offsets = [2, 0, 0], sizes = [1, 8, 128], strides = [1, 1, 1]} : vector<8x8x128xf32> to vector<1x8x128xf32>
    %193 = vector.shape_cast %192 : vector<1x8x128xf32> to vector<8x128xf32>
    %194 = vector.extract_strided_slice %185 {offsets = [3, 0, 0], sizes = [1, 8, 128], strides = [1, 1, 1]} : vector<8x8x128xf32> to vector<1x8x128xf32>
    %195 = vector.shape_cast %194 : vector<1x8x128xf32> to vector<8x128xf32>
    %196 = vector.extract_strided_slice %185 {offsets = [4, 0, 0], sizes = [1, 8, 128], strides = [1, 1, 1]} : vector<8x8x128xf32> to vector<1x8x128xf32>
    %197 = vector.shape_cast %196 : vector<1x8x128xf32> to vector<8x128xf32>
    %198 = vector.extract_strided_slice %185 {offsets = [5, 0, 0], sizes = [1, 8, 128], strides = [1, 1, 1]} : vector<8x8x128xf32> to vector<1x8x128xf32>
    %199 = vector.shape_cast %198 : vector<1x8x128xf32> to vector<8x128xf32>
    %200 = vector.extract_strided_slice %185 {offsets = [6, 0, 0], sizes = [1, 8, 128], strides = [1, 1, 1]} : vector<8x8x128xf32> to vector<1x8x128xf32>
    %201 = vector.shape_cast %200 : vector<1x8x128xf32> to vector<8x128xf32>
    %202 = vector.extract_strided_slice %185 {offsets = [7, 0, 0], sizes = [1, 8, 128], strides = [1, 1, 1]} : vector<8x8x128xf32> to vector<1x8x128xf32>
    %203 = vector.shape_cast %202 : vector<1x8x128xf32> to vector<8x128xf32>
    %204 = tpu.concatenate %189, %191, %193, %195, %197, %199, %201, %203 in 1 : vector<8x128xf32>, vector<8x128xf32>, vector<8x128xf32>, vector<8x128xf32>, vector<8x128xf32>, vector<8x128xf32>, vector<8x128xf32>, vector<8x128xf32> -> vector<8x1024xf32>
    %205 = vector.extract_strided_slice %186 {offsets = [0, 0, 0], sizes = [1, 8, 128], strides = [1, 1, 1]} : vector<8x8x128xf32> to vector<1x8x128xf32>
    %206 = vector.shape_cast %205 : vector<1x8x128xf32> to vector<8x128xf32>
    %207 = vector.extract_strided_slice %186 {offsets = [1, 0, 0], sizes = [1, 8, 128], strides = [1, 1, 1]} : vector<8x8x128xf32> to vector<1x8x128xf32>
    %208 = vector.shape_cast %207 : vector<1x8x128xf32> to vector<8x128xf32>
    %209 = vector.extract_strided_slice %186 {offsets = [2, 0, 0], sizes = [1, 8, 128], strides = [1, 1, 1]} : vector<8x8x128xf32> to vector<1x8x128xf32>
    %210 = vector.shape_cast %209 : vector<1x8x128xf32> to vector<8x128xf32>
    %211 = vector.extract_strided_slice %186 {offsets = [3, 0, 0], sizes = [1, 8, 128], strides = [1, 1, 1]} : vector<8x8x128xf32> to vector<1x8x128xf32>
    %212 = vector.shape_cast %211 : vector<1x8x128xf32> to vector<8x128xf32>
    %213 = vector.extract_strided_slice %186 {offsets = [4, 0, 0], sizes = [1, 8, 128], strides = [1, 1, 1]} : vector<8x8x128xf32> to vector<1x8x128xf32>
    %214 = vector.shape_cast %213 : vector<1x8x128xf32> to vector<8x128xf32>
    %215 = vector.extract_strided_slice %186 {offsets = [5, 0, 0], sizes = [1, 8, 128], strides = [1, 1, 1]} : vector<8x8x128xf32> to vector<1x8x128xf32>
    %216 = vector.shape_cast %215 : vector<1x8x128xf32> to vector<8x128xf32>
    %217 = vector.extract_strided_slice %186 {offsets = [6, 0, 0], sizes = [1, 8, 128], strides = [1, 1, 1]} : vector<8x8x128xf32> to vector<1x8x128xf32>
    %218 = vector.shape_cast %217 : vector<1x8x128xf32> to vector<8x128xf32>
    %219 = vector.extract_strided_slice %186 {offsets = [7, 0, 0], sizes = [1, 8, 128], strides = [1, 1, 1]} : vector<8x8x128xf32> to vector<1x8x128xf32>
    %220 = vector.shape_cast %219 : vector<1x8x128xf32> to vector<8x128xf32>
    %221 = tpu.concatenate %206, %208, %210, %212, %214, %216, %218, %220 in 1 : vector<8x128xf32>, vector<8x128xf32>, vector<8x128xf32>, vector<8x128xf32>, vector<8x128xf32>, vector<8x128xf32>, vector<8x128xf32>, vector<8x128xf32> -> vector<8x1024xf32>
    %222 = vector.extract_strided_slice %187 {offsets = [0, 0, 0], sizes = [1, 8, 128], strides = [1, 1, 1]} : vector<8x8x128xf32> to vector<1x8x128xf32>
    %223 = vector.shape_cast %222 : vector<1x8x128xf32> to vector<8x128xf32>
    %224 = vector.extract_strided_slice %187 {offsets = [1, 0, 0], sizes = [1, 8, 128], strides = [1, 1, 1]} : vector<8x8x128xf32> to vector<1x8x128xf32>
    %225 = vector.shape_cast %224 : vector<1x8x128xf32> to vector<8x128xf32>
    %226 = vector.extract_strided_slice %187 {offsets = [2, 0, 0], sizes = [1, 8, 128], strides = [1, 1, 1]} : vector<8x8x128xf32> to vector<1x8x128xf32>
    %227 = vector.shape_cast %226 : vector<1x8x128xf32> to vector<8x128xf32>
    %228 = vector.extract_strided_slice %187 {offsets = [3, 0, 0], sizes = [1, 8, 128], strides = [1, 1, 1]} : vector<8x8x128xf32> to vector<1x8x128xf32>
    %229 = vector.shape_cast %228 : vector<1x8x128xf32> to vector<8x128xf32>
    %230 = vector.extract_strided_slice %187 {offsets = [4, 0, 0], sizes = [1, 8, 128], strides = [1, 1, 1]} : vector<8x8x128xf32> to vector<1x8x128xf32>
    %231 = vector.shape_cast %230 : vector<1x8x128xf32> to vector<8x128xf32>
    %232 = vector.extract_strided_slice %187 {offsets = [5, 0, 0], sizes = [1, 8, 128], strides = [1, 1, 1]} : vector<8x8x128xf32> to vector<1x8x128xf32>
    %233 = vector.shape_cast %232 : vector<1x8x128xf32> to vector<8x128xf32>
    %234 = vector.extract_strided_slice %187 {offsets = [6, 0, 0], sizes = [1, 8, 128], strides = [1, 1, 1]} : vector<8x8x128xf32> to vector<1x8x128xf32>
    %235 = vector.shape_cast %234 : vector<1x8x128xf32> to vector<8x128xf32>
    %236 = vector.extract_strided_slice %187 {offsets = [7, 0, 0], sizes = [1, 8, 128], strides = [1, 1, 1]} : vector<8x8x128xf32> to vector<1x8x128xf32>
    %237 = vector.shape_cast %236 : vector<1x8x128xf32> to vector<8x128xf32>
    %238 = tpu.concatenate %223, %225, %227, %229, %231, %233, %235, %237 in 1 : vector<8x128xf32>, vector<8x128xf32>, vector<8x128xf32>, vector<8x128xf32>, vector<8x128xf32>, vector<8x128xf32>, vector<8x128xf32>, vector<8x128xf32> -> vector<8x1024xf32>
    %239 = tpu.concatenate %204, %221, %238 in 1 : vector<8x1024xf32>, vector<8x1024xf32>, vector<8x1024xf32> -> vector<8x3072xf32>
    %cst_33 = arith.constant dense<0.000000e+00> : vector<8x3072xf32>
    %240 = tpu.matmul %3, %239, %cst_33 {dimension_numbers = #tpu.dot_dimension_numbers<[1], [0], [0], [1], [0, 0, 1, 1], [], []>} : vector<8x8xf32>, vector<8x3072xf32>, vector<8x3072xf32> -> vector<8x3072xf32>
    %241 = vector.extract_strided_slice %240 {offsets = [0, 0], sizes = [8, 1024], strides = [1, 1]} : vector<8x3072xf32> to vector<8x1024xf32>
    %242 = vector.extract_strided_slice %240 {offsets = [0, 1024], sizes = [8, 1024], strides = [1, 1]} : vector<8x3072xf32> to vector<8x1024xf32>
    %243 = vector.extract_strided_slice %240 {offsets = [0, 2048], sizes = [8, 1024], strides = [1, 1]} : vector<8x3072xf32> to vector<8x1024xf32>
    %244 = arith.mulf %204, %241 : vector<8x1024xf32>
    %245 = arith.mulf %221, %242 : vector<8x1024xf32>
    %246 = arith.addf %244, %245 : vector<8x1024xf32>
    %247 = arith.mulf %238, %243 : vector<8x1024xf32>
    %248 = arith.addf %246, %247 : vector<8x1024xf32>
    %249 = arith.mulf %241, %241 : vector<8x1024xf32>
    %250 = arith.mulf %242, %242 : vector<8x1024xf32>
    %251 = arith.addf %249, %250 : vector<8x1024xf32>
    %252 = arith.mulf %243, %243 : vector<8x1024xf32>
    %253 = arith.addf %251, %252 : vector<8x1024xf32>
    %cst_34 = arith.constant 0.000000e+00 : f32
    %254 = vector.broadcast %cst_34 : f32 to vector<8x1024xf32>
    %255 = arith.cmpf oge, %248, %254 : vector<8x1024xf32>
    %cst_35 = arith.constant 8.000000e-01 : f32
    %256 = vector.broadcast %cst_35 : f32 to vector<8x1024xf32>
    %257 = arith.mulf %256, %248 : vector<8x1024xf32>
    %cst_36 = arith.constant 9.99999997E-7 : f32
    %258 = vector.broadcast %cst_36 : f32 to vector<8x1024xf32>
    %259 = arith.addf %253, %258 : vector<8x1024xf32>
    %260 = arith.divf %257, %259 : vector<8x1024xf32>
    %cst_37 = arith.constant 0.000000e+00 : f32
    %261 = vector.broadcast %cst_37 : f32 to vector<8x1024xf32>
    %262 = arith.select %255, %261, %260 : vector<8x1024xi1>, vector<8x1024xf32>
    %263 = arith.mulf %262, %241 : vector<8x1024xf32>
    %264 = arith.subf %204, %263 : vector<8x1024xf32>
    %c0_38 = arith.constant 0 : index
    %c0_39 = arith.constant 0 : index
    %c0_40 = arith.constant 0 : index
    %265 = vector.load %arg6[%c0_38, %c0_39, %c0_40] : memref<3x8x1024xf32, #tpu.memory_space<vmem>>, vector<1x8x1024xf32>
    %266 = vector.shape_cast %265 : vector<1x8x1024xf32> to vector<8x1024xf32>
    %267 = vector.shape_cast %264 : vector<8x1024xf32> to vector<1x8x1024xf32>
    tpu.vector_store %arg6[%c0_38, %c0_39, %c0_40], %267 {strides = array<i32>} : memref<3x8x1024xf32, #tpu.memory_space<vmem>>, vector<1x8x1024xf32>,
    %268 = arith.mulf %262, %242 : vector<8x1024xf32>
    %269 = arith.subf %221, %268 : vector<8x1024xf32>
    %c1 = arith.constant 1 : index
    %c0_41 = arith.constant 0 : index
    %c0_42 = arith.constant 0 : index
    %270 = vector.load %arg6[%c1, %c0_41, %c0_42] : memref<3x8x1024xf32, #tpu.memory_space<vmem>>, vector<1x8x1024xf32>
    %271 = vector.shape_cast %270 : vector<1x8x1024xf32> to vector<8x1024xf32>
    %272 = vector.shape_cast %269 : vector<8x1024xf32> to vector<1x8x1024xf32>
    tpu.vector_store %arg6[%c1, %c0_41, %c0_42], %272 {strides = array<i32>} : memref<3x8x1024xf32, #tpu.memory_space<vmem>>, vector<1x8x1024xf32>,
    %273 = arith.mulf %262, %243 : vector<8x1024xf32>
    %274 = arith.subf %238, %273 : vector<8x1024xf32>
    %c2 = arith.constant 2 : index
    %c0_43 = arith.constant 0 : index
    %c0_44 = arith.constant 0 : index
    %275 = vector.load %arg6[%c2, %c0_43, %c0_44] : memref<3x8x1024xf32, #tpu.memory_space<vmem>>, vector<1x8x1024xf32>
    %276 = vector.shape_cast %275 : vector<1x8x1024xf32> to vector<8x1024xf32>
    %277 = vector.shape_cast %274 : vector<8x1024xf32> to vector<1x8x1024xf32>
    tpu.vector_store %arg6[%c2, %c0_43, %c0_44], %277 {strides = array<i32>} : memref<3x8x1024xf32, #tpu.memory_space<vmem>>, vector<1x8x1024xf32>,
    return
  }
}

</mosaic_0001>

<bundles_post_ra>
// kernel: tpu_custom_call.1
= control target key start
LH: loop header
LB: loop body
LE: loop exit
PB: predicated region body
PF: predicated region fallthrough
CT: control target
= control target key end

     0   :  { %11 = vsyncpa [#allocation3], 0  ;;  %s2839_s0 = inlined_call_operand.vmem [shape: f32[3,4,128], index: 0, kind: input, shape index: {}]   ;;  %s2840_s1 = inlined_call_operand.hbm [shape: f32[8,8], index: 1, kind: input, shape index: {}]   ;;  %s2841_s2 = inlined_call_operand.hbm [shape: f32[8,8], index: 2, kind: input, shape index: {}]   ;;  %s2842_s3 = inlined_call_operand.hbm [shape: f32[8,8], index: 3, kind: input, shape index: {}]   ;;  %s2843_s4 = inlined_call_operand.vmem [shape: f32[8,1], index: 4, kind: input, shape index: {}]   ;;  %s2844_s5 = inlined_call_operand.vmem [shape: f32[8,1], index: 5, kind: input, shape index: {}]   ;;  %s2845_s6 = inlined_call_operand.hbm [shape: f32[3,8,1024], index: 6, kind: output, shape index: {}]  }
   0x1   :  { %12 = vsyncpa [#allocation6], 0  ;;  %s32_s23 = sshll.u32 %s2841_s2, 4  ;;  %s33_s23 = int_to_ptr.hbm [resolvable:$true] %s32_s23 }
   0x2   :  { %13 = vsyncpa [#allocation4], 0  ;;  %s1753_s24 = smov [#allocation5]   ;;  %s21_s28 = sshll.u32 %s2840_s1, 4  ;;  %s22_s28 = int_to_ptr.hbm [resolvable:$true] %s21_s28 }
   0x3   :  { %s34_s25 = sshll.u32 %s1753_s24, 4  ;;  %s1754_s29 = smov [#allocation2]   ;;  %s35_s25 = int_to_ptr.vmem [resolvable:$true] %s34_s25 }
   0x4   :  { %37 = dma.hbm_to_vmem [thread:$0]  %s33_s23, 128, %s35_s25, [#allocation6]  }
   0x5   :  { %s23_s30 = sshll.u32 %s1754_s29, 4  ;;  %s43_s9 = sshll.u32 %s2842_s3, 4  ;;  %s24_s30 = int_to_ptr.vmem [resolvable:$true] %s23_s30  ;;  %s44_s9 = int_to_ptr.hbm [resolvable:$true] %s43_s9 }
   0x6   :  { %26 = dma.hbm_to_vmem [thread:$0]  %s22_s28, 128, %s24_s30, [#allocation3]  }
   0x7   :  { %s1755_s2 = smov [#allocation7]  }
   0x8   :  { %s45_s10 = sshll.u32 %s1755_s2, 4  ;;  %s46_s10 = int_to_ptr.vmem [resolvable:$true] %s45_s10 }
   0x9   :  { %48 = dma.hbm_to_vmem [thread:$0]  %s44_s9, 128, %s46_s10, [#allocation6]  }
   0xa   :  { %1747 = dma.done.wait [#allocation3], 128  }
   0xb   :  { %1748 = vsyncadd [#allocation3], 4294967168 }
   0xc   :  { %1749 = dma.done.wait [#allocation6], 256  }
   0xd   :  { %1750 = vsyncadd [#allocation6], 4294967040  ;;  %v1756_v0 = vmov 4.0   ;;  %vm73_vm0 = vcmask 1043456   ;;  %v65_v2 = vld [vmem:[%s2839_s0] sm:$0xf] }
   0xe   :  { %1597 = vrcp.f32 %v1756_v0  ;;  %v66_v3 = vld [vmem:[%s2839_s0 + $0x4] sm:$0xf]  ;;  %v67_v4 = vld [vmem:[%s2839_s0 + $0x8] sm:$0xf]  ;;  %v74_v5 = vsel %vm73_vm0, %v65_v2, 0.0  ;;  %vm2858_vm2 = vcmask 64512  }
   0xf   :  { %v89_v7 = vsel %vm73_vm0, %v66_v3, 0.0  ;;  %v75_v8 = vrot.slane %v74_v5, 4  ;;  %v97_v10 = vsel %vm73_vm0, %v67_v4, 0.0  ;;  %v68_v45 = vld [vmem:[#allocation2] sm:$0xff]  ;;  %v69_v0 = vld [vmem:[#allocation5] sm:$0xff]  ;;  %s1542_s20 = sshll.u32 %s2845_s6, 4  ;;  %s1543_s20 = int_to_ptr.hbm [resolvable:$true] %s1542_s20 }
  0x10   :  { %v90_v9 = vrot.slane %v89_v7, 4  ;;  %v98_v12 = vrot.slane %v97_v10, 4  ;;  %s1759_s21 = smov 1024   ;;  %s1760_s22 = smov 64  }
  0x11   :  { %v76_v13 = vadd.f32 %v75_v8, %v74_v5 }
  0x12   :  { %v91_v14 = vadd.f32 %v90_v9, %v89_v7  ;;  %v99_v16 = vadd.f32 %v98_v12, %v97_v10 }
  0x13   :  { %v77_v17 = vrot.slane %v76_v13, 2 }
  0x14   :  { %v1598_v1 = vpop.eup %1597  ;;  %v92_v18 = vrot.slane %v91_v14, 2  ;;  %v100_v20 = vrot.slane %v99_v16, 2 }
  0x15   :  { %v82_v6 = vmul.f32 4.0, %v1598_v1  ;;  %v78_v21 = vadd.f32 %v77_v17, %v76_v13  ;;  %vm86_vm1 = vweird.f32 %v1598_v1 }
  0x16   :  { %v93_v22 = vadd.f32 %v92_v18, %v91_v14  ;;  %v101_v23 = vadd.f32 %v100_v20, %v99_v16 }
  0x17   :  { %v83_v11 = vsub.f32 1.0, %v82_v6  ;;  %v79_v25 = vrot.slane %v78_v21, 1 }
  0x18   :  { %v94_v24 = vrot.slane %v93_v22, 1  ;;  %v102_v27 = vrot.slane %v101_v23, 1 }
  0x19   :  { %v84_v15 = vmul.f32 %v1598_v1, %v83_v11  ;;  %v80_v29 = vadd.f32 %v79_v25, %v78_v21 }
  0x1a   :  { %v95_v28 = vadd.f32 %v94_v24, %v93_v22  ;;  %v103_v30 = vadd.f32 %v102_v27, %v101_v23 }
  0x1b   :  { %v85_v19 = vadd.f32 %v1598_v1, %v84_v15 }
  0x1d   :  { %v87_v26 = vsel %vm86_vm1, %v1598_v1, %v85_v19 }
  0x1e   :  { %v96_v31 = vmul.f32 %v95_v28, %v87_v26  ;;  %v88_v32 = vmul.f32 %v87_v26, %v80_v29  ;;  %v104_v33 = vmul.f32 %v103_v30, %v87_v26 }
  0x20   :  { %v106_v34 = vmul.f32 %v96_v31, %v67_v4  ;;  %v111_v35 = vmul.f32 %v96_v31, %v65_v2  ;;  %v112_v36 = vmul.f32 %v88_v32, %v66_v3  ;;  %v108_v37 = vmul.f32 %v88_v32, %v67_v4 }
  0x21   :  { %v105_v38 = vmul.f32 %v104_v33, %v66_v3  ;;  %v109_v39 = vmul.f32 %v104_v33, %v65_v2 }
  0x22   :  { %v113_v40 = vsub.f32 %v111_v35, %v112_v36 }
  0x23   :  { %v107_v41 = vsub.f32 %v105_v38, %v106_v34  ;;  %v110_v42 = vsub.f32 %v108_v37, %v109_v39 }
  0x24   :  { %v123_v43 = vrot.slane %v113_v40, 4 }
  0x25   :  { %v115_v44 = vrot.slane %v107_v41, 4  ;;  %v119_v46 = vrot.slane %v110_v42, 4 }
  0x26   :  { %v125_v47 = vsel %vm73_vm0, %v67_v4, %v123_v43 }
  0x27   :  { %v117_v48 = vsel %vm73_vm0, %v65_v2, %v115_v44  ;;  %213 = vmatpush.msra.mxu2 %v125_v47  ;;  %v121_v49 = vsel %vm73_vm0, %v66_v3, %v119_v46  ;;  %v128_v50 = vrot.slane %v125_v47, 7 }
  0x28   :  { %v126_v51 = vrot.slane %v117_v48, 7  ;;  %173 = vmatpush.msra.mxu0 %v117_v48  ;;  %1558 = vmatmul.msk.f32.vlgmr.msra.gmra.mxu2 %vm2858_vm2, %v68_v45  ;;  %v127_v52 = vrot.slane %v121_v49, 7 }
  0x29   :  { %1556 = vmatmul.msk.f32.vlgmr.msra.gmra.mxu0 %vm2858_vm2, %v68_v45  ;;  %193 = vmatpush.msra.mxu1 %v121_v49  ;;  %v130_v53 = vmul.f32 %v128_v50, %v121_v49  ;;  %v141_v54 = vmul.f32 %v128_v50, %v128_v50  ;;  %v132_v55 = vmul.f32 %v128_v50, %v117_v48 }
  0x2a   :  { %v138_v56 = vmul.f32 %v126_v51, %v126_v51  ;;  %1557 = vmatmul.msk.f32.vlgmr.msra.gmra.mxu1 %vm2858_vm2, %v68_v45  ;;  %v129_v57 = vmul.f32 %v127_v52, %v125_v47  ;;  %v139_v58 = vmul.f32 %v127_v52, %v127_v52  ;;  %v133_v59 = vmul.f32 %v126_v51, %v125_v47 }
  0x2b   :  { %v135_v60 = vmul.f32 %v126_v51, %v121_v49  ;;  %v136_v61 = vmul.f32 %v127_v52, %v117_v48 }
  0x2c   :  { %v131_v62 = vsub.f32 %v129_v57, %v130_v53  ;;  %v140_v63 = vadd.f32 %v139_v58, %v138_v56  ;;  %v134_v1 = vsub.f32 %v132_v55, %v133_v59 }
  0x2d   :  { %v137_v2 = vsub.f32 %v135_v60, %v136_v61 }
  0x2e   :  { %v142_v3 = vadd.f32 %v141_v54, %v140_v63  ;;  %236 = vmatpush.msra.mxu3 %v131_v62  ;;  %256 = vmatpush.msrb.mxu0 %v134_v1 }
  0x2f   :  { %1559 = vmatmul.msk.f32.vlgmr.msra.gmra.mxu3 %vm2858_vm2, %v69_v0  ;;  %276 = vmatpush.msrb.mxu1 %v137_v2 }
  0x30   :  { %v143_v4 = vadd.f32 1e-06, %v142_v3 }
  0x31   :  { %1560 = vmatmul.msk.f32.vlgmr.msrb.gmra.mxu0 %vm2858_vm2, %v69_v0 }
  0x32   :  { %1561 = vmatmul.msk.f32.vlgmr.msrb.gmra.mxu1 %vm2858_vm2, %v69_v0  ;;  %1599 = vrsqrt.f32 %v143_v4  ;;  %vm150_vm3 = vweird.f32 %v143_v4 }
  0x38   :  { %v1600_v5 = vpop.eup %1599 }
  0x39   :  { %v145_v6 = vmul.f32 %v1600_v5, %v143_v4  ;;  %vm151_vm4 = vweird.f32 %v1600_v5 }
  0x3a   :  { %vm152_vm5 = vmor %vm150_vm3, %vm151_vm4 }
  0x3b   :  { %v146_v7 = vmul.f32 %v1600_v5, %v145_v6 }
  0x3d   :  { %v147_v8 = vmul.f32 0.5, %v146_v7 }
  0x3f   :  { %v148_v9 = vsub.f32 1.5, %v147_v8 }
  0x41   :  { %v149_v10 = vmul.f32 %v1600_v5, %v148_v9 }
  0x43   :  { %v153_v13 = vsel %vm152_vm5, %v1600_v5, %v149_v10 }
  0x44   :  { %v1830_v14 = vperm.slane %v153_v13, 0  ;;  %v1832_v15 = vperm.slane %v153_v13, 1  ;;  %v1834_v16 = vperm.slane %v153_v13, 2  ;;  %v1836_v17 = vperm.slane %v153_v13, 3 }
  0x45   :  { %v1838_v18 = vperm.slane %v153_v13, 5  ;;  %v1840_v19 = vperm.slane %v153_v13, 4  ;;  %v1842_v20 = vperm.slane %v153_v13, 6  ;;  %v1922_v61 = vperm.slane %v153_v13, 7 }
  0x46   :  { %2891 = vst [vmem:[#allocation13_spill] sm:$0xff] %v1830_v14  ;;  %v291_v22 = vmul.f32 %v1834_v16, %v1834_v16  ;;  %v290_v23 = vmul.f32 %v1832_v15, %v1832_v15  ;;  %v289_v24 = vmul.f32 %v1830_v14, %v1830_v14  ;;  %v292_v55 = vmul.f32 %v1836_v17, %v1836_v17 }
  0x47   :  { %2892 = vst [vmem:[#allocation14_spill] sm:$0xff] %v1832_v15  ;;  %v294_v25 = vmul.f32 %v1838_v18, %v1838_v18  ;;  %v293_v56 = vmul.f32 %v1840_v19, %v1840_v19  ;;  %v295_v62 = vmul.f32 %v1842_v20, %v1842_v20 }
  0x48   :  { %2893 = vst [vmem:[#allocation15_spill] sm:$0xff] %v1834_v16 }
  0x49   :  { %2894 = vst [vmem:[#allocation16_spill] sm:$0xff] %v1836_v17 }
  0x4a   :  { %2895 = vst [vmem:[#allocation17_spill] sm:$0xff] %v1842_v20 }
  0x4b   :  { %2901 = vst [vmem:[#allocation23_spill] sm:$0xff] %v1922_v61 }
  0xa6   :  { %v1826_v11 = vpop.f32.mrf.mxu0 }
  0xa7   :  { %v1828_v12 = vpop.f32.mrf.mxu1  ;;  %v345_v28 = vmul.f32 %v1826_v11, %v1826_v11 }
  0xa8   :  { %2890 = vst [vmem:[#allocation12_spill] sm:$0xff] %v1828_v12  ;;  %v346_v29 = vmul.f32 %v1828_v12, %v1828_v12 }
  0xaa   :  { %v347_v47 = vadd.f32 %v346_v29, %v345_v28 }
  0xab   :  { %v1866_v32 = vpop.f32.mrf.mxu2 }
  0xac   :  { %2896 = vst [vmem:[#allocation18_spill] sm:$0xff] %v1866_v32  ;;  %v348_v48 = vmul.f32 %v1866_v32, %v1866_v32 }
  0xae   :  { %v1844_v21 = vpop.f32.mrf.mxu0  ;;  %v349_v63 = vadd.f32 %v348_v48, %v347_v47 }
  0xaf   :  { %v313_v26 = vmul.f32 %v1830_v14, %v1844_v21  ;;  %v314_v27 = vmul.f32 %v1832_v15, %v1844_v21  ;;  %v315_v30 = vmul.f32 %v1834_v16, %v1844_v21  ;;  %v316_v31 = vmul.f32 %v1836_v17, %v1844_v21  ;;  %v1872_v35 = vpop.f32.mrf.mxu1 }
  0xb0   :  { %v351_v33 = vmul.f32 %v1844_v21, %v1828_v12  ;;  %v357_v34 = vmul.f32 %v1844_v21, %v1844_v21  ;;  %2897 = vst [vmem:[#allocation19_spill] sm:$0xff] %v1872_v35  ;;  %v353_v39 = vmul.f32 %v1872_v35, %v1866_v32  ;;  %v359_v40 = vmul.f32 %v1872_v35, %v1872_v35 }
  0xb1   :  { %v1875_v36 = vadd.f32 %v313_v26, %v1828_v12  ;;  %v1878_v37 = vadd.f32 %v314_v27, %v1828_v12  ;;  %v1887_v41 = vadd.f32 %v315_v30, %v1828_v12  ;;  %v1890_v42 = vadd.f32 %v316_v31, %v1828_v12 }
  0xb2   :  { %v1880_v38 = vpop.f32.mrf.mxu3 }
  0xb3   :  { %2898 = vst [vmem:[#allocation20_spill] sm:$0xff] %v1878_v37  ;;  %v350_v43 = vmul.f32 %v1880_v38, %v1826_v11  ;;  %v356_v44 = vmul.f32 %v1880_v38, %v1880_v38  ;;  %v297_v45 = vmul.f32 %v1830_v14, %v1880_v38  ;;  %v298_v46 = vmul.f32 %v1832_v15, %v1880_v38 }
  0xb4   :  { %2899 = vst [vmem:[#allocation21_spill] sm:$0xff] %v1887_v41  ;;  %v299_v49 = vmul.f32 %v1834_v16, %v1880_v38  ;;  %v300_v50 = vmul.f32 %v1836_v17, %v1880_v38 }
  0xb5   :  { %2900 = vst [vmem:[#allocation22_spill] sm:$0xff] %v1890_v42  ;;  %v352_v51 = vadd.f32 %v351_v33, %v350_v43  ;;  %v358_v52 = vadd.f32 %v357_v34, %v356_v44  ;;  %v1907_v53 = vadd.f32 %v297_v45, %v1826_v11  ;;  %v1910_v54 = vadd.f32 %v298_v46, %v1826_v11 }
  0xb6   :  { %v1917_v57 = vadd.f32 %v299_v49, %v1826_v11  ;;  %v1920_v58 = vadd.f32 %v300_v50, %v1826_v11  ;;  %v296_v50 = vmul.f32 %v1922_v61, %v1922_v61 }
  0xb7   :  { %v354_v59 = vadd.f32 %v353_v39, %v352_v51  ;;  %v360_v60 = vadd.f32 %v359_v40, %v358_v52 }
  0xb9   :  { %v355_v0 = vmul.f32 2.0, %v354_v59  ;;  %v379_v1 = vmul.f32 %v360_v60, %v291_v22  ;;  %v378_v2 = vmul.f32 %v360_v60, %v290_v23  ;;  %v377_v3 = vmul.f32 %v360_v60, %v289_v24 }
  0xba   :  { %v382_v4 = vmul.f32 %v360_v60, %v294_v25  ;;  %v380_v5 = vmul.f32 %v360_v60, %v292_v55  ;;  %v381_v6 = vmul.f32 %v360_v60, %v293_v56  ;;  %v383_v22 = vmul.f32 %v360_v60, %v295_v62 }
  0xbb   :  { %v363_v7 = vmul.f32 %v355_v0, %v1834_v16  ;;  %v362_v8 = vmul.f32 %v355_v0, %v1832_v15  ;;  %v361_v9 = vmul.f32 %v355_v0, %v1830_v14  ;;  %v366_v10 = vmul.f32 %v355_v0, %v1838_v18 }
  0xbc   :  { %v364_v13 = vmul.f32 %v355_v0, %v1836_v17  ;;  %v365_v26 = vmul.f32 %v355_v0, %v1840_v19  ;;  %v367_v27 = vmul.f32 %v355_v0, %v1842_v20  ;;  %v368_v33 = vmul.f32 %v355_v0, %v1922_v61 }
  0xbd   :  { %v371_v23 = vadd.f32 %v363_v7, %v349_v63  ;;  %v370_v24 = vadd.f32 %v362_v8, %v349_v63  ;;  %v369_v25 = vadd.f32 %v361_v9, %v349_v63  ;;  %v374_v28 = vadd.f32 %v366_v10, %v349_v63 }
  0xbe   :  { %v372_v29 = vadd.f32 %v364_v13, %v349_v63  ;;  %v373_v30 = vadd.f32 %v365_v26, %v349_v63  ;;  %v375_v31 = vadd.f32 %v367_v27, %v349_v63  ;;  %v376_v0 = vadd.f32 %v368_v33, %v349_v63 }
  0xbf   :  { %v387_v34 = vadd.f32 %v379_v1, %v371_v23  ;;  %v386_v39 = vadd.f32 %v378_v2, %v370_v24  ;;  %v385_v40 = vadd.f32 %v377_v3, %v369_v25  ;;  %v390_v43 = vadd.f32 %v382_v4, %v374_v28 }
  0xc0   :  { %v388_v44 = vadd.f32 %v380_v5, %v372_v29  ;;  %v389_v45 = vadd.f32 %v381_v6, %v373_v30  ;;  %v391_v46 = vadd.f32 %v383_v22, %v375_v31  ;;  %v384_v4 = vmul.f32 %v360_v60, %v296_v50 }
  0xc1   :  { %v395_v47 = vmax.f32 %v387_v34, 0.0  ;;  %v394_v48 = vmax.f32 %v386_v39, 0.0  ;;  %v393_v49 = vmax.f32 %v385_v40, 0.0  ;;  %v398_v51 = vmax.f32 %v390_v43, 0.0 }
  0xc2   :  { %v396_v52 = vmax.f32 %v388_v44, 0.0  ;;  %v397_v55 = vmax.f32 %v389_v45, 0.0  ;;  %v399_v3 = vmax.f32 %v391_v46, 0.0  ;;  %v392_v63 = vadd.f32 %v384_v4, %v376_v0 }
  0xc3   :  { %v1936_v56 = vadd.f32 1e-06, %v395_v47  ;;  %v1938_v59 = vadd.f32 1e-06, %v394_v48  ;;  %v1940_v62 = vadd.f32 1e-06, %v393_v49 }
  0xc4   :  { %v1942_v1 = vadd.f32 1e-06, %v396_v52  ;;  %v1944_v2 = vadd.f32 1e-06, %v397_v55  ;;  %v1951_v5 = vadd.f32 1e-06, %v398_v51 }
  0xc5   :  { %532 = vadd.xlane.f32.xlu0 %v1936_v56  ;;  %530 = vadd.xlane.f32.xlu2 %v1938_v59  ;;  %1601 = vrsqrt.f32 %v1936_v56  ;;  %v1954_v6 = vadd.f32 1e-06, %v399_v3  ;;  %v400_v8 = vmax.f32 %v392_v63, 0.0  ;;  %vm440_vm6 = vcmp.eq.f32.partialorder %v1936_v56, inf }
  0xc6   :  { %528 = vadd.xlane.f32.xlu1 %v1940_v62  ;;  %1603 = vrsqrt.f32 %v1942_v1  ;;  %vm442_vm7 = vcmp.eq.f32.partialorder %v1936_v56, 0.0  ;;  %v443_v40 = vand.u32 2147483648, %v1936_v56  ;;  %vm452_vm8 = vcmp.eq.f32.partialorder %v1942_v1, inf }
  0xc7   :  { %1605 = vrsqrt.f32 %v1940_v62  ;;  %v1964_v26 = vadd.f32 1e-06, %v400_v8  ;;  %vm454_vm9 = vcmp.eq.f32.partialorder %v1942_v1, 0.0  ;;  %v455_v63 = vand.u32 2147483648, %v1942_v1 }
  0xc8   :  { %1607 = vrsqrt.f32 %v1944_v2  ;;  %vm416_vm10 = vcmp.eq.f32.partialorder %v1940_v62, inf  ;;  %vm418_vm11 = vcmp.eq.f32.partialorder %v1940_v62, 0.0  ;;  %vm464_vm12 = vcmp.eq.f32.partialorder %v1944_v2, inf }
  0xc9   :  { %1609 = vrsqrt.f32 %v1938_v59  ;;  %vm488_vm13 = vcmp.eq.f32.partialorder %v1954_v6, inf  ;;  %vm466_vm14 = vcmp.eq.f32.partialorder %v1944_v2, 0.0  ;;  %vm428_vm15 = vcmp.eq.f32.partialorder %v1938_v59, inf }
  0xca   :  { %1611 = vrsqrt.f32 %v1954_v6  ;;  %vm490_vm0 = vcmp.eq.f32.partialorder %v1954_v6, 0.0  ;;  %vm430_vm1 = vcmp.eq.f32.partialorder %v1938_v59, 0.0  ;;  %vm500_vm3 = vcmp.eq.f32.partialorder %v1964_v26, inf }
  0xcb   :  { %v1602_v7 = vpop.eup %1601  ;;  %1613 = vrsqrt.f32 %v1951_v5  ;;  %vm476_vm4 = vcmp.eq.f32.partialorder %v1951_v5, inf  ;;  %vm502_vm5 = vcmp.eq.f32.partialorder %v1964_v26, 0.0 }
  0xcc   :  { %v1604_v60 = vpop.eup %1603  ;;  %v434_v9 = vmul.f32 %v1602_v7, %v1936_v56  ;;  %1615 = vrsqrt.f32 %v1964_v26 }
  0xcd   :  { %v1606_v10 = vpop.eup %1605  ;;  %538 = vadd.xlane.f32.xlu0 %v1951_v5  ;;  %534 = vadd.xlane.f32.xlu2 %v1942_v1  ;;  %v446_v13 = vmul.f32 %v1604_v60, %v1942_v1 }
  0xce   :  { %v1608_v27 = vpop.eup %1607  ;;  %536 = vadd.xlane.f32.xlu1 %v1944_v2  ;;  %v435_v22 = vmul.f32 %v1602_v7, %v434_v9  ;;  %v410_v23 = vmul.f32 %v1606_v10, %v1940_v62 }
  0xcf   :  { %v1610_v24 = vpop.eup %1609  ;;  %v447_v25 = vmul.f32 %v1604_v60, %v446_v13  ;;  %v458_v28 = vmul.f32 %v1608_v27, %v1944_v2 }
  0xd0   :  { %v1612_v29 = vpop.eup %1611  ;;  %v436_v30 = vmul.f32 0.5, %v435_v22  ;;  %v411_v31 = vmul.f32 %v1606_v10, %v410_v23  ;;  %v422_v33 = vmul.f32 %v1610_v24, %v1938_v59 }
  0xd1   :  { %v1973_v34 = vpop.eup %1613  ;;  %v448_v39 = vmul.f32 0.5, %v447_v25  ;;  %v482_v43 = vmul.f32 %v1612_v29, %v1954_v6  ;;  %v459_v44 = vmul.f32 %v1608_v27, %v458_v28 }
  0xd2   :  { %v437_v45 = vsub.f32 1.5, %v436_v30  ;;  %v412_v46 = vmul.f32 0.5, %v411_v31  ;;  %v423_v47 = vmul.f32 %v1610_v24, %v422_v33  ;;  %v470_v51 = vmul.f32 %v1973_v34, %v1951_v5  ;;  %v1616_v3 = vpop.eup %1615 }
  0xd3   :  { %v449_v48 = vsub.f32 1.5, %v448_v39  ;;  %v483_v49 = vmul.f32 %v1612_v29, %v482_v43  ;;  %v460_v50 = vmul.f32 0.5, %v459_v44  ;;  %v494_v39 = vmul.f32 %v1616_v3, %v1964_v26 }
  0xd4   :  { %v438_v52 = vmul.f32 %v1602_v7, %v437_v45  ;;  %v413_v55 = vsub.f32 1.5, %v412_v46  ;;  %v424_v0 = vmul.f32 0.5, %v423_v47  ;;  %v471_v7 = vmul.f32 %v1973_v34, %v470_v51 }
  0xd5   :  { %v450_v4 = vmul.f32 %v1604_v60, %v449_v48  ;;  %v484_v8 = vmul.f32 0.5, %v483_v49  ;;  %v461_v9 = vsub.f32 1.5, %v460_v50  ;;  %v467_v49 = vand.u32 2147483648, %v1944_v2 }
  0xd6   :  { %v439_v13 = vmul.f32 %v438_v52, %v1936_v56  ;;  %v414_v22 = vmul.f32 %v1606_v10, %v413_v55  ;;  %v425_v23 = vsub.f32 1.5, %v424_v0  ;;  %v472_v47 = vmul.f32 0.5, %v471_v7 }
  0xd7   :  { %v451_v25 = vmul.f32 %v450_v4, %v1942_v1  ;;  %v485_v28 = vsub.f32 1.5, %v484_v8  ;;  %v462_v30 = vmul.f32 %v1608_v27, %v461_v9  ;;  %v419_v27 = vand.u32 2147483648, %v1940_v62 }
  0xd8   :  { %v441_v60 = vsel %vm440_vm6, %v1936_v56, %v439_v13  ;;  %v415_v31 = vmul.f32 %v414_v22, %v1940_v62  ;;  %v426_v33 = vmul.f32 %v1610_v24, %v425_v23  ;;  %v491_v50 = vand.u32 2147483648, %v1954_v6 }
  0xd9   :  { %v453_v10 = vsel %vm452_vm8, %v1942_v1, %v451_v25  ;;  %v1996_v43 = vsel %vm442_vm7, %v443_v40, %v441_v60  ;;  %v486_v44 = vmul.f32 %v1612_v29, %v485_v28  ;;  %v463_v46 = vmul.f32 %v462_v30, %v1944_v2 }
  0xda   :  { %v2001_v45 = vsel %vm454_vm9, %v455_v63, %v453_v10  ;;  %509 = vadd.xlane.f32.xlu1 %v1996_v43  ;;  %v417_v24 = vsel %vm416_vm10, %v1940_v62, %v415_v31  ;;  %v427_v1 = vmul.f32 %v426_v33, %v1938_v59  ;;  %v495_v40 = vmul.f32 %v1616_v3, %v494_v39 }
  0xdb   :  { %511 = vadd.xlane.f32.xlu2 %v2001_v45  ;;  %v2010_v56 = vsel %vm418_vm11, %v419_v27, %v417_v24  ;;  %v487_v29 = vmul.f32 %v486_v44, %v1954_v6  ;;  %v465_v62 = vsel %vm464_vm12, %v1944_v2, %v463_v46  ;;  %v473_v55 = vsub.f32 1.5, %v472_v47 }
  0xdc   :  { %505 = vadd.xlane.f32.xlu0 %v2010_v56  ;;  %v429_v51 = vsel %vm428_vm15, %v1938_v59, %v427_v1  ;;  %v496_v52 = vmul.f32 0.5, %v495_v40  ;;  %v2025_v0 = vsel %vm466_vm14, %v467_v49, %v465_v62  ;;  %v431_v4 = vand.u32 2147483648, %v1938_v59 }
  0xdd   :  { %v489_v48 = vsel %vm488_vm13, %v1954_v6, %v487_v29  ;;  %v474_v9 = vmul.f32 %v1973_v34, %v473_v55  ;;  %v503_v25 = vand.u32 2147483648, %v1964_v26  ;;  %vm478_vm6 = vcmp.eq.f32.partialorder %v1951_v5, 0.0 }
  0xde   :  { %v2028_v63 = vsel %vm490_vm0, %v491_v50, %v489_v48  ;;  %v497_v2 = vsub.f32 1.5, %v496_v52  ;;  %v2033_v8 = vsel %vm430_vm1, %v431_v4, %v429_v51 }
  0xdf   :  { %v475_v22 = vmul.f32 %v474_v9, %v1951_v5 }
  0xe0   :  { %v498_v13 = vmul.f32 %v1616_v3, %v497_v2  ;;  %v479_v3 = vand.u32 2147483648, %v1951_v5 }
  0xe1   :  { %v477_v28 = vsel %vm476_vm4, %v1951_v5, %v475_v22 }
  0xe2   :  { %513 = vadd.xlane.f32.xlu1 %v2025_v0  ;;  %v499_v23 = vmul.f32 %v498_v13, %v1964_v26  ;;  %v2051_v30 = vsel %vm478_vm6, %v479_v3, %v477_v28 }
  0xe3   :  { %517 = vadd.xlane.f32.xlu2 %v2028_v63 }
  0xe4   :  { %507 = vadd.xlane.f32.xlu0 %v2033_v8  ;;  %v501_v59 = vsel %vm500_vm3, %v1964_v26, %v499_v23 }
  0xe5   :  { %v2045_v34 = vsel %vm502_vm5, %v503_v25, %v501_v59 }
  0xea   :  { %519 = vadd.xlane.f32.xlu1 %v2045_v34 }
  0xeb   :  { %540 = vadd.xlane.f32.xlu2 %v1954_v6 }
  0xec   :  { %515 = vadd.xlane.f32.xlu0 %v2051_v30 }
  0xf4   :  { %542 = vadd.xlane.f32.xlu0 %v1964_v26  ;;  %v1757_v26 = vmov 0  }
  0xf5   :  { %1594 = vset.pattern.permute.xlu1 %v1757_v26  ;;  %1595 = vset.pattern.permute.xlu2 %v1757_v26 }
  0xf6   :  { %1596 = vset.pattern.permute.xlu0 %v1757_v26  ;;  %v2079_v26 = vadd.f32 1e-06, %v2025_v0 }
  0xf8   :  { %vm668_vm13 = vweird.f32 %v2079_v26 }
 0x138   :  { %v533_v60 = vpop.xlane.xlu0 %532  ;;  %v531_v31 = vpop.xlane.xlu2 %530 }
 0x139   :  { %v529_v7 = vpop.xlane.xlu1 %528 }
 0x13a   :  { %v544_v46 = vadd.f32 %v531_v31, %v529_v7 }
 0x13c   :  { %v545_v40 = vadd.f32 %v544_v46, %v533_v60 }
 0x140   :  { %v539_v39 = vpop.xlane.xlu0 %538  ;;  %v535_v10 = vpop.xlane.xlu2 %534 }
 0x141   :  { %v537_v33 = vpop.xlane.xlu1 %536  ;;  %v546_v62 = vadd.f32 %v545_v40, %v535_v10  ;;  %v2062_v40 = vadd.f32 1e-06, %v1996_v43 }
 0x143   :  { %v547_v51 = vadd.f32 %v546_v62, %v537_v33  ;;  %v2068_v62 = vadd.f32 1e-06, %v2010_v56  ;;  %vm638_vm10 = vweird.f32 %v2062_v40 }
 0x145   :  { %v548_v9 = vadd.f32 %v547_v51, %v539_v39  ;;  %v71_v39 = vld [vmem:[%s2843_s4] sm:$0xff]  ;;  %v2087_v51 = vadd.f32 1e-06, %v2045_v34  ;;  %v614_v15 = vand.u32 2147483648, %v2068_v62  ;;  %vm608_vm12 = vweird.f32 %v2068_v62  ;;  %s1758_s4 = smov [#allocation8]  }
 0x147   :  { %vm713_vm4 = vweird.f32 %v2087_v51 }
 0x14d   :  { %v510_v27 = vpop.xlane.xlu1 %509 }
 0x14e   :  { %v512_v44 = vpop.xlane.xlu2 %511 }
 0x14f   :  { %v506_v24 = vpop.xlane.xlu0 %505 }
 0x155   :  { %v514_v6 = vpop.xlane.xlu1 %513 }
 0x156   :  { %v518_v1 = vpop.xlane.xlu2 %517 }
 0x157   :  { %v508_v29 = vpop.xlane.xlu0 %507 }
 0x158   :  { %v521_v5 = vadd.f32 %v508_v29, %v506_v24 }
 0x15a   :  { %v522_v47 = vadd.f32 %v521_v5, %v510_v27  ;;  %v72_v5 = vld [vmem:[%s2844_s5] sm:$0xff]  ;;  %s1540_s5 = sshll.u32 %s1758_s4, 4  ;;  %s1541_s5 = int_to_ptr.vmem [resolvable:$true] %s1540_s5 }
 0x15c   :  { %v523_v48 = vadd.f32 %v522_v47, %v512_v44  ;;  %v2065_v47 = vadd.f32 1e-06, %v2001_v45 }
 0x15d   :  { %v520_v2 = vpop.xlane.xlu1 %519 }
 0x15e   :  { %v524_v49 = vadd.f32 %v523_v48, %v514_v6  ;;  %v541_v4 = vpop.xlane.xlu2 %540  ;;  %v2071_v48 = vadd.f32 1e-06, %v2028_v63  ;;  %vm653_vm11 = vweird.f32 %v2065_v47 }
 0x15f   :  { %v516_v50 = vpop.xlane.xlu0 %515  ;;  %v549_v22 = vadd.f32 %v548_v9, %v541_v4 }
 0x160   :  { %v525_v52 = vadd.f32 %v524_v49, %v516_v50  ;;  %v2075_v49 = vadd.f32 1e-06, %v2033_v8  ;;  %v2083_v50 = vadd.f32 1e-06, %v2051_v30  ;;  %vm698_vm0 = vweird.f32 %v2071_v48 }
 0x162   :  { %v526_v55 = vadd.f32 %v525_v52, %v518_v1  ;;  %vm623_vm15 = vweird.f32 %v2075_v49  ;;  %vm683_vm1 = vweird.f32 %v2083_v50 }
 0x164   :  { %v527_v13 = vadd.f32 %v526_v55, %v520_v2 }
 0x166   :  { %v551_v23 = vmul.f32 0.0009765625, %v527_v13 }
 0x167   :  { %v543_v25 = vpop.xlane.xlu0 %542 }
 0x168   :  { %v550_v59 = vadd.f32 %v549_v22, %v543_v25  ;;  %v553_v28 = vmul.f32 %v551_v23, %v551_v23  ;;  %v644_v25 = vand.u32 2147483648, %v2062_v40 }
 0x16a   :  { %v552_v3 = vmul.f32 0.0009765625, %v550_v59 }
 0x16c   :  { %v554_v7 = vsub.f32 %v552_v3, %v553_v28 }
 0x16e   :  { %v555_v60 = vadd.f32 1e-05, %v554_v7  ;;  %v659_v7 = vand.u32 2147483648, %v2065_v47 }
 0x170   :  { %1617 = vrsqrt.f32 %v555_v60  ;;  %vm562_vm8 = vweird.f32 %v555_v60 }
 0x171   :  { %1619 = vrcp.f32 %v2062_v40 }
 0x172   :  { %1621 = vrcp.f32 %v2065_v47 }
 0x173   :  { %1623 = vrcp.f32 %v2068_v62 }
 0x174   :  { %1625 = vrcp.f32 %v2071_v48 }
 0x175   :  { %1627 = vrcp.f32 %v2075_v49 }
 0x176   :  { %v1618_v31 = vpop.eup %1617  ;;  %1629 = vrcp.f32 %v2079_v26 }
 0x177   :  { %v557_v10 = vmul.f32 %v1618_v31, %v555_v60  ;;  %vm563_vm7 = vweird.f32 %v1618_v31  ;;  %v2091_v52 = vpop.eup %1619  ;;  %1631 = vrcp.f32 %v2083_v50 }
 0x178   :  { %vm564_vm9 = vmor %vm562_vm8, %vm563_vm7  ;;  %v2094_v55 = vpop.eup %1621  ;;  %1633 = vrcp.f32 %v2087_v51  ;;  %v634_v22 = vmul.f32 %v2091_v52, %v2062_v40  ;;  %vm639_vm5 = vweird.f32 %v2091_v52 }
 0x179   :  { %v558_v27 = vmul.f32 %v1618_v31, %v557_v10  ;;  %v2097_v4 = vpop.eup %1623  ;;  %v649_v3 = vmul.f32 %v2094_v55, %v2065_v47  ;;  %vm654_vm8 = vweird.f32 %v2094_v55  ;;  %vm2207_vm2 = vmor %vm638_vm10, %vm639_vm5 }
 0x17a   :  { %v2099_v2 = vpop.eup %1625  ;;  %v604_v59 = vmul.f32 %v2097_v4, %v2068_v62  ;;  %vm609_vm14 = vweird.f32 %v2097_v4 }
 0x17b   :  { %v559_v44 = vmul.f32 0.5, %v558_v27  ;;  %v2101_v9 = vpop.eup %1627  ;;  %v694_v10 = vmul.f32 %v2099_v2, %v2071_v48  ;;  %v704_v27 = vand.u32 2147483648, %v2071_v48  ;;  %v650_v17 = vsub.f32 1.0, %v649_v3  ;;  %vm2182_vm6 = vmor %vm608_vm12, %vm609_vm14 }
 0x17c   :  { %v2103_v13 = vpop.eup %1629  ;;  %v619_v60 = vmul.f32 %v2101_v9, %v2075_v49  ;;  %vm624_vm3 = vweird.f32 %v2101_v9  ;;  %vm699_vm10 = vweird.f32 %v2099_v2 }
 0x17d   :  { %v560_v33 = vsub.f32 1.5, %v559_v44  ;;  %v2128_v44 = vmul.f32 %v1838_v18, %v1880_v38  ;;  %vm669_vm12 = vweird.f32 %v2103_v13 }
 0x17e   :  { %v620_v16 = vsub.f32 1.0, %v619_v60  ;;  %vm2225_vm5 = vmor %vm668_vm13, %vm669_vm12 }
 0x17f   :  { %v561_v24 = vmul.f32 %v1618_v31, %v560_v33  ;;  %v2132_v33 = vmul.f32 %v1842_v20, %v1880_v38 }
 0x181   :  { %v565_v46 = vsel %vm564_vm9, %v1618_v31, %v561_v24  ;;  %v2121_v31 = vmul.f32 %v1840_v19, %v1880_v38  ;;  %v664_v24 = vmul.f32 %v2103_v13, %v2079_v26  ;;  %vm2194_vm9 = vmor %vm623_vm15, %vm624_vm3 }
 0x182   :  { %v566_v29 = vmul.f32 %v565_v46, %v71_v39  ;;  %v635_v39 = vsub.f32 1.0, %v634_v22  ;;  %v674_v46 = vand.u32 2147483648, %v2079_v26  ;;  %v2147_v22 = vor.u32 1.1754944e-38, %v659_v7  ;;  %vm2216_vm3 = vmor %vm653_vm11, %vm654_vm8 }
 0x183   :  { %v665_v35 = vsub.f32 1.0, %v664_v24  ;;  %v621_v24 = vmul.f32 %v2101_v9, %v620_v16 }
 0x184   :  { %571 = vperm.xlu1 %1594, %v566_v29   ;;  %v567_v1 = vmul.f32 %v566_v29, %v551_v23  ;;  %v2107_v23 = vpop.eup %1631  ;;  %v2139_v29 = vmul.f32 %v1922_v61, %v1880_v38  ;;  %v695_v38 = vsub.f32 1.0, %v694_v10  ;;  %v636_v14 = vmul.f32 %v2091_v52, %v635_v39 }
 0x185   :  { %v2112_v28 = vpop.eup %1633  ;;  %v679_v32 = vmul.f32 %v2107_v23, %v2083_v50  ;;  %v2158_v3 = vor.u32 1.1754944e-38, %v674_v46  ;;  %v651_v10 = vmul.f32 %v2094_v55, %v650_v17  ;;  %v615_v39 = vor.u32 1.1754944e-38, %v614_v15 }
 0x186   :  { %v568_v6 = vsub.f32 %v72_v5, %v567_v1  ;;  %v2141_v5 = vor.u32 1.1754944e-38, %v644_v25  ;;  %v605_v1 = vsub.f32 1.0, %v604_v59  ;;  %v2152_v25 = vor.u32 1.1754944e-38, %v704_v27 }
 0x187   :  { %v612_v59 = vand.u32 2147483647, %v2068_v62  ;;  %v680_v60 = vsub.f32 1.0, %v679_v32  ;;  %v719_v27 = vand.u32 2147483648, %v2087_v51  ;;  %v696_v46 = vmul.f32 %v2099_v2, %v695_v38 }
 0x188   :  { %584 = vperm.xlu2 %1595, %v568_v6   ;;  %v709_v6 = vmul.f32 %v2112_v28, %v2087_v51  ;;  %v606_v12 = vmul.f32 %v2097_v4, %v605_v1  ;;  %v627_v32 = vand.u32 2147483647, %v2075_v49  ;;  %v666_v1 = vmul.f32 %v2103_v13, %v665_v35 }
 0x189   :  { %v689_v17 = vand.u32 2147483648, %v2083_v50  ;;  %v681_v16 = vmul.f32 %v2107_v23, %v680_v60  ;;  %vm2186_vm7 = vcmp.eq.f32.partialorder %v612_v59, 8.507059e+37  ;;  %v720_v61 = vor.u32 1.1754944e-38, %v719_v27 }
 0x18a   :  { %v710_v7 = vsub.f32 1.0, %v709_v6  ;;  %v607_v6 = vadd.f32 %v2097_v4, %v606_v12  ;;  %v637_v62 = vadd.f32 %v2091_v52, %v636_v14  ;;  %vm2200_vm14 = vcmp.eq.f32.partialorder %v627_v32, 8.507059e+37 }
 0x18b   :  { %v629_v60 = vand.u32 2147483648, %v2075_v49  ;;  %vm684_vm15 = vweird.f32 %v2107_v23  ;;  %v642_v14 = vand.u32 2147483647, %v2062_v40  ;;  %v657_v49 = vand.u32 2147483647, %v2065_v47 }
 0x18c   :  { %v711_v15 = vmul.f32 %v2112_v28, %v710_v7  ;;  %v622_v7 = vadd.f32 %v2101_v9, %v621_v24  ;;  %v652_v24 = vadd.f32 %v2094_v55, %v651_v10  ;;  %v667_v42 = vadd.f32 %v2103_v13, %v666_v1  ;;  %vm2247_vm13 = vmor %vm683_vm1, %vm684_vm15 }
 0x18d   :  { %v682_v40 = vadd.f32 %v2107_v23, %v681_v16  ;;  %v697_v41 = vadd.f32 %v2099_v2, %v696_v46  ;;  %vm714_vm11 = vweird.f32 %v2112_v28  ;;  %v611_v47 = vsel %vm2182_vm6, %v2097_v4, %v607_v6  ;;  %vm2257_vm6 = vmor %vm698_vm0, %vm699_vm10 }
 0x18e   :  { %v712_v20 = vadd.f32 %v2112_v28, %v711_v15  ;;  %v626_v1 = vsel %vm2194_vm9, %v2101_v9, %v622_v7  ;;  %v641_v37 = vsel %vm2207_vm2, %v2091_v52, %v637_v62  ;;  %v672_v16 = vand.u32 2147483647, %v2079_v26  ;;  %vm2267_vm8 = vmor %vm713_vm4, %vm714_vm11  ;;  %v2931_v52 = vld [vmem:[#allocation20_spill] sm:$0xff] }
 0x18f   :  { %v656_v4 = vsel %vm2216_vm3, %v2094_v55, %v652_v24  ;;  %v687_v9 = vand.u32 2147483647, %v2083_v50  ;;  %v702_v26 = vand.u32 2147483647, %v2071_v48  ;;  %v717_v15 = vand.u32 2147483647, %v2087_v51 }
 0x190   :  { %v690_v6 = vor.u32 1.1754944e-38, %v689_v17  ;;  %v630_v38 = vor.u32 1.1754944e-38, %v629_v60  ;;  %vm643_vm2 = vcmp.eq.f32.partialorder %v642_v14, 8.507059e+37  ;;  %vm658_vm1 = vcmp.eq.f32.partialorder %v657_v49, 8.507059e+37 }
 0x191   :  { %v671_v55 = vsel %vm2225_vm5, %v2103_v13, %v667_v42  ;;  %v686_v48 = vsel %vm2247_vm13, %v2107_v23, %v682_v40  ;;  %v701_v17 = vsel %vm2257_vm6, %v2099_v2, %v697_v41  ;;  %v716_v51 = vsel %vm2267_vm8, %v2112_v28, %v712_v20 }
 0x192   :  { %v616_v7 = vsel %vm2186_vm7, %v615_v39, %v611_v47  ;;  %v631_v12 = vsel %vm2200_vm14, %v630_v38, %v626_v1  ;;  %v646_v42 = vsel %vm643_vm2, %v2141_v5, %v641_v37  ;;  %v661_v13 = vsel %vm658_vm1, %v2147_v22, %v656_v4  ;;  %v2934_v38 = vld [vmem:[#allocation21_spill] sm:$0xff] }
 0x193   :  { %vm673_vm0 = vcmp.eq.f32.partialorder %v672_v16, 8.507059e+37  ;;  %vm688_vm4 = vcmp.eq.f32.partialorder %v687_v9, 8.507059e+37  ;;  %vm703_vm9 = vcmp.eq.f32.partialorder %v702_v26, 8.507059e+37  ;;  %vm718_vm12 = vcmp.eq.f32.partialorder %v717_v15, 8.507059e+37  ;;  %v2933_v15 = vld [vmem:[#allocation17_spill] sm:$0xff] }
 0x194   :  { %v676_v41 = vsel %vm673_vm0, %v2158_v3, %v671_v55  ;;  %v691_v2 = vsel %vm688_vm4, %v690_v6, %v686_v48  ;;  %v706_v20 = vsel %vm703_vm9, %v2152_v25, %v701_v17  ;;  %v721_v28 = vsel %vm718_vm12, %v720_v61, %v716_v51  ;;  %v2935_v55 = vld [vmem:[#allocation22_spill] sm:$0xff]  ;;  %v2937_v51 = vld [vmem:[#allocation12_spill] sm:$0xff] }
 0x195   :  { %v309_v1 = vadd.f32 %v2121_v31, %v1826_v11  ;;  %v310_v16 = vadd.f32 %v2128_v44, %v1826_v11  ;;  %v312_v9 = vadd.f32 %v2139_v29, %v1826_v11  ;;  %vm2927_vm7 = vcmask 64512  }
 0x196   :  { %vm2928_vm14 = vmmov %vm2927_vm7  ;;  %v319_v6 = vmul.f32 %v2933_v15, %v1844_v21 }
 0x197   :  { %vm2929_vm15 = vmmov %vm2927_vm7 }
 0x198   :  { %vm2930_vm3 = vmmov %vm2927_vm7 }
 0x199   :  { %vm2938_vm10 = vmmov %vm2930_vm3 }
 0x19a   :  { %vm2939_vm5 = vmmov %vm2930_vm3 }
 0x19b   :  { %vm2942_vm11 = vmmov %vm2930_vm3 }
 0x19c   :  { %vm2943_vm13 = vmmov %vm2930_vm3 }
 0x19d   :  { %vm2952_vm6 = vmmov %vm2930_vm3 }
 0x19e   :  { %vm2953_vm2 = vmmov %vm2930_vm3 }
 0x19f   :  { %vm2955_vm1 = vmmov %vm2953_vm2 }
 0x1a0   :  { %vm2956_vm8 = vmmov %vm2955_vm1 }
 0x1a1   :  { %vm2957_vm0 = vmmov %vm2955_vm1 }
 0x1a2   :  { %vm2958_vm4 = vmmov %vm2957_vm0 }
 0x1a3   :  { %vm2961_vm9 = vmmov %vm2957_vm0 }
 0x1a4   :  { %vm2962_vm12 = vmmov %vm2957_vm0 }
 0x1e2   :  { %v585_v5 = vpop.permute.xlu2 %584 }
 0x1f6   :  { %v572_v23 = vpop.permute.xlu1 %571 }
 0x1f7   :  { %v576_v39 = vmul.f32 %v572_v23, %v1996_v43  ;;  %v577_v35 = vmul.f32 %v572_v23, %v2001_v45  ;;  %v578_v62 = vmul.f32 %v572_v23, %v2025_v0  ;;  %v579_v37 = vmul.f32 %v572_v23, %v2051_v30 }
 0x1f8   :  { %v580_v22 = vmul.f32 %v572_v23, %v2028_v63  ;;  %v581_v59 = vmul.f32 %v572_v23, %v2045_v34  ;;  %v574_v60 = vmul.f32 %v572_v23, %v2010_v56  ;;  %v575_v3 = vmul.f32 %v572_v23, %v2033_v8 }
 0x1f9   :  { %v589_v27 = vadd.f32 %v585_v5, %v576_v39  ;;  %v590_v25 = vadd.f32 %v585_v5, %v577_v35  ;;  %v591_v61 = vadd.f32 %v585_v5, %v578_v62  ;;  %v592_v24 = vadd.f32 %v585_v5, %v579_v37  ;;  %v2948_v35 = vld [vmem:[#allocation14_spill] sm:$0xff]  ;;  %v2949_v37 = vld [vmem:[#allocation15_spill] sm:$0xff] }
 0x1fa   :  { %v587_v43 = vadd.f32 %v585_v5, %v574_v60  ;;  %v588_v14 = vadd.f32 %v585_v5, %v575_v3  ;;  %v593_v45 = vadd.f32 %v585_v5, %v580_v22  ;;  %v594_v32 = vadd.f32 %v585_v5, %v581_v59  ;;  %v2950_v22 = vld [vmem:[#allocation16_spill] sm:$0xff]  ;;  %v2951_v60 = vld [vmem:[#allocation18_spill] sm:$0xff] }
 0x1fb   :  { %v2299_v0 = vmul.f32 %v646_v42, %v589_v27  ;;  %v2301_v30 = vmul.f32 %v661_v13, %v590_v25  ;;  %v2303_v49 = vmul.f32 %v676_v41, %v591_v61  ;;  %v2305_v63 = vmul.f32 %v691_v2, %v592_v24 }
 0x1fc   :  { %v2307_v34 = vmul.f32 %v616_v7, %v587_v43  ;;  %v2309_v56 = vmul.f32 %v631_v12, %v588_v14  ;;  %v2311_v8 = vmul.f32 %v706_v20, %v593_v45  ;;  %v2313_v10 = vmul.f32 %v721_v28, %v594_v32  ;;  %v2946_v20 = vld [vmem:[#allocation19_spill] sm:$0xff]  ;;  %v2947_v28 = vld [vmem:[#allocation13_spill] sm:$0xff] }
 0x1fd   :  { %v2317_v40 = vmul.f32 %v2299_v0, %v1917_v57  ;;  %v2321_v47 = vmul.f32 %v2301_v30, %v1920_v58  ;;  %v2335_v57 = vld [vmem:[#allocation7] sm:$0xff]  ;;  %v311_v58 = vadd.f32 %v2132_v33, %v1826_v11  ;;  %v2344_v31 = vmul.f32 %v2303_v49, %v309_v1 }
 0x1fe   :  { %v2329_v46 = vmul.f32 %v2307_v34, %v1907_v53  ;;  %v2333_v4 = vmul.f32 %v2309_v56, %v1910_v54  ;;  %v2347_v53 = vmul.f32 %v2305_v63, %v310_v16  ;;  %v2355_v44 = vmul.f32 %v2313_v10, %v312_v9 }
 0x1ff   :  { %805 = vmatpush.msra.mxu0 %v2317_v40  ;;  %825 = vmatpush.msra.mxu1 %v2321_v47  ;;  %2923 = vst [vmem:[#allocation25_spill] sm:$0xff] %v2344_v31  ;;  %v2352_v54 = vmul.f32 %v2311_v8, %v311_v58  ;;  %v317_v11 = vmul.f32 %v1840_v19, %v1844_v21 }
 0x200   :  { %2922 = vst [vmem:[#allocation24_spill] sm:$0xff] %v2333_v4  ;;  %765 = vmatpush.msrb.mxu2 %v2329_v46  ;;  %785 = vmatpush.msrb.mxu3 %v2333_v4  ;;  %v318_v33 = vmul.f32 %v1838_v18, %v1844_v21  ;;  %v2373_v29 = vmul.f32 %v2307_v34, %v1875_v36  ;;  %v2936_v36 = vld [vmem:[#allocation23_spill] sm:$0xff] }
 0x201   :  { %2924 = vst [vmem:[#allocation26_spill] sm:$0xff] %v2347_v53  ;;  %1562 = vmatmul.msk.f32.vlgmr.msrb.gmra.mxu2 %vm2927_vm7, %v2335_v57  ;;  %1563 = vmatmul.msk.f32.vlgmr.msrb.gmra.mxu3 %vm2928_vm14, %v2335_v57  ;;  %v2377_v26 = vmul.f32 %v2309_v56, %v2931_v52  ;;  %v2385_v50 = vmul.f32 %v2299_v0, %v2934_v38  ;;  %vm2963_vm7 = vmmov %vm2957_vm0 }
 0x202   :  { %2925 = vst [vmem:[#allocation27_spill] sm:$0xff] %v2352_v54  ;;  %1564 = vmatmul.msk.f32.vlgmr.msra.gmra.mxu0 %vm2929_vm15, %v2335_v57  ;;  %1565 = vmatmul.msk.f32.vlgmr.msra.gmra.mxu1 %vm2930_vm3, %v2335_v57  ;;  %v2389_v48 = vmul.f32 %v2301_v30, %v2935_v55  ;;  %v320_v17 = vmul.f32 %v2936_v36, %v1844_v21  ;;  %vm2964_vm14 = vmmov %vm2957_vm0 }
 0x203   :  { %2926 = vst [vmem:[#allocation28_spill] sm:$0xff] %v2355_v44  ;;  %845 = vmatpush.msra.mxu2 %v2344_v31  ;;  %865 = vmatpush.msra.mxu3 %v2347_v53  ;;  %v325_v7 = vadd.f32 %v317_v11, %v2937_v51  ;;  %v326_v12 = vadd.f32 %v318_v33, %v2937_v51  ;;  %vm2965_vm15 = vmmov %vm2957_vm0 }
 0x204   :  { %2932 = vst [vmem:[#allocation20_spill] sm:$0xff] %v2377_v26  ;;  %885 = vmatpush.msrb.mxu0 %v2352_v54  ;;  %905 = vmatpush.msrb.mxu1 %v2355_v44  ;;  %v327_v42 = vadd.f32 %v319_v6, %v2937_v51  ;;  %v328_v13 = vadd.f32 %v320_v17, %v2937_v51  ;;  %vm2966_vm3 = vmmov %vm2957_vm0 }
 0x205   :  { %925 = vmatpush.msrb.mxu2 %v2373_v29  ;;  %945 = vmatpush.msrb.mxu3 %v2377_v26  ;;  %v2406_v21 = vmul.f32 %v2303_v49, %v325_v7  ;;  %v2409_v23 = vmul.f32 %v2305_v63, %v326_v12  ;;  %v329_v39 = vmul.f32 %v2947_v28, %v2946_v20 }
 0x206   :  { %965 = vmatpush.msra.mxu0 %v2385_v50  ;;  %985 = vmatpush.msra.mxu1 %v2389_v48  ;;  %v2416_v41 = vmul.f32 %v2311_v8, %v327_v42  ;;  %v2419_v2 = vmul.f32 %v2313_v10, %v328_v13  ;;  %v330_v62 = vmul.f32 %v2948_v35, %v2946_v20 }
 0x207   :  { %2940 = vst [vmem:[#allocation17_spill] sm:$0xff] %v2406_v21  ;;  %v331_v5 = vmul.f32 %v2949_v37, %v2946_v20  ;;  %v332_v59 = vmul.f32 %v2950_v22, %v2946_v20  ;;  %v337_v3 = vadd.f32 %v329_v39, %v2951_v60  ;;  %v333_v32 = vmul.f32 %v1840_v19, %v2946_v20 }
 0x208   :  { %2941 = vst [vmem:[#allocation21_spill] sm:$0xff] %v2409_v23  ;;  %v338_v27 = vadd.f32 %v330_v62, %v2951_v60 }
 0x209   :  { %1566 = vmatmul.msk.f32.vlgmr.msra.gmra.mxu2 %vm2938_vm10, %v2335_v57  ;;  %1567 = vmatmul.msk.f32.vlgmr.msra.gmra.mxu3 %vm2939_vm5, %v2335_v57  ;;  %2944 = vst [vmem:[#allocation22_spill] sm:$0xff] %v2416_v41  ;;  %v339_v25 = vadd.f32 %v331_v5, %v2951_v60  ;;  %v340_v61 = vadd.f32 %v332_v59, %v2951_v60  ;;  %vm2967_vm10 = vmmov %vm2957_vm0 }
 0x20a   :  { %1568 = vmatmul.msk.f32.vlgmr.msrb.gmra.mxu0 %vm2942_vm11, %v2335_v57  ;;  %1569 = vmatmul.msk.f32.vlgmr.msrb.gmra.mxu1 %vm2943_vm13, %v2335_v57  ;;  %2945 = vst [vmem:[#allocation23_spill] sm:$0xff] %v2419_v2  ;;  %v2442_v24 = vmul.f32 %v2307_v34, %v337_v3  ;;  %v2445_v43 = vmul.f32 %v2309_v56, %v338_v27  ;;  %vm2968_vm5 = vmmov %vm2957_vm0 }
 0x20b   :  { %1005 = vmatpush.msra.mxu2 %v2406_v21  ;;  %1025 = vmatpush.msra.mxu3 %v2409_v23  ;;  %v2452_v14 = vmul.f32 %v2299_v0, %v339_v25  ;;  %v2455_v45 = vmul.f32 %v2301_v30, %v340_v61  ;;  %v334_v34 = vmul.f32 %v1838_v18, %v2946_v20  ;;  %vm2969_vm11 = vmmov %vm2957_vm0 }
 0x20c   :  { %1045 = vmatpush.msrb.mxu0 %v2416_v41  ;;  %1065 = vmatpush.msrb.mxu1 %v2419_v2  ;;  %2954 = vst [vmem:[#allocation12_spill] sm:$0xff] %v2445_v43  ;;  %v335_v0 = vmul.f32 %v2933_v15, %v2946_v20  ;;  %v336_v30 = vmul.f32 %v2936_v36, %v2946_v20  ;;  %vm2970_vm13 = vmmov %vm2957_vm0 }
 0x20d   :  { %v341_v56 = vadd.f32 %v333_v32, %v2951_v60  ;;  %v342_v1 = vadd.f32 %v334_v34, %v2951_v60 }
 0x20e   :  { %v343_v16 = vadd.f32 %v335_v0, %v2951_v60  ;;  %v344_v19 = vadd.f32 %v336_v30, %v2951_v60 }
 0x20f   :  { %v2478_v18 = vmul.f32 %v2303_v49, %v341_v56  ;;  %v2481_v58 = vmul.f32 %v2305_v63, %v342_v1 }
 0x210   :  { %v2488_v9 = vmul.f32 %v2311_v8, %v343_v16  ;;  %v2491_v11 = vmul.f32 %v2313_v10, %v344_v19 }
 0x211   :  { %1570 = vmatmul.msk.f32.vlgmr.msrb.gmra.mxu2 %vm2952_vm6, %v2335_v57  ;;  %1571 = vmatmul.msk.f32.vlgmr.msrb.gmra.mxu3 %vm2953_vm2, %v2335_v57  ;;  %2959 = vst [vmem:[#allocation19_spill] sm:$0xff] %v2478_v18 }
 0x212   :  { %1572 = vmatmul.msk.f32.vlgmr.msra.gmra.mxu0 %vm2955_vm1, %v2335_v57  ;;  %1573 = vmatmul.msk.f32.vlgmr.msra.gmra.mxu1 %vm2956_vm8, %v2335_v57  ;;  %2960 = vst [vmem:[#allocation13_spill] sm:$0xff] %v2481_v58 }
 0x213   :  { %1085 = vmatpush.msrb.mxu2 %v2442_v24  ;;  %1105 = vmatpush.msrb.mxu3 %v2445_v43 }
 0x214   :  { %1125 = vmatpush.msra.mxu0 %v2452_v14  ;;  %1145 = vmatpush.msra.mxu1 %v2455_v45 }
 0x219   :  { %1574 = vmatmul.msk.f32.vlgmr.msra.gmra.mxu2 %vm2957_vm0, %v2335_v57  ;;  %1575 = vmatmul.msk.f32.vlgmr.msra.gmra.mxu3 %vm2958_vm4, %v2335_v57 }
 0x21a   :  { %1576 = vmatmul.msk.f32.vlgmr.msrb.gmra.mxu0 %vm2961_vm9, %v2335_v57  ;;  %1577 = vmatmul.msk.f32.vlgmr.msrb.gmra.mxu1 %vm2962_vm12, %v2335_v57 }
 0x21b   :  { %1165 = vmatpush.msra.mxu2 %v2478_v18  ;;  %1185 = vmatpush.msra.mxu3 %v2481_v58 }
 0x21c   :  { %1205 = vmatpush.msrb.mxu0 %v2488_v9  ;;  %1225 = vmatpush.msrb.mxu1 %v2491_v11 }
 0x221   :  { %1578 = vmatmul.msk.f32.vlgmr.msrb.gmra.mxu2 %vm2963_vm7, %v2335_v57  ;;  %1579 = vmatmul.msk.f32.vlgmr.msrb.gmra.mxu3 %vm2964_vm14, %v2335_v57 }
 0x222   :  { %1580 = vmatmul.msk.f32.vlgmr.msra.gmra.mxu0 %vm2965_vm15, %v2335_v57  ;;  %1581 = vmatmul.msk.f32.vlgmr.msra.gmra.mxu1 %vm2966_vm3, %v2335_v57 }
 0x229   :  { %1582 = vmatmul.msk.f32.vlgmr.msra.gmra.mxu2 %vm2967_vm10, %v2335_v57  ;;  %1583 = vmatmul.msk.f32.vlgmr.msra.gmra.mxu3 %vm2968_vm5, %v2335_v57 }
 0x22a   :  { %1584 = vmatmul.msk.f32.vlgmr.msrb.gmra.mxu0 %vm2969_vm11, %v2335_v57  ;;  %1585 = vmatmul.msk.f32.vlgmr.msrb.gmra.mxu1 %vm2970_vm13, %v2335_v57 }
 0x27f   :  { %v2513_v49 = vpop.f32.mrf.mxu0  ;;  %v2515_v63 = vpop.f32.mrf.mxu1 }
 0x280   :  { %v1232_v13 = vmul.f32 %v2513_v49, %v2317_v40  ;;  %v1272_v20 = vmul.f32 %v2513_v49, %v2513_v49  ;;  %v1233_v39 = vmul.f32 %v2515_v63, %v2321_v47  ;;  %v1273_v35 = vmul.f32 %v2515_v63, %v2515_v63 }
 0x284   :  { %v2517_v8 = vpop.f32.mrf.mxu2  ;;  %v2519_v10 = vpop.f32.mrf.mxu3 }
 0x285   :  { %v1230_v62 = vmul.f32 %v2517_v8, %v2329_v46  ;;  %v1270_v37 = vmul.f32 %v2517_v8, %v2517_v8  ;;  %v1231_v22 = vmul.f32 %v2519_v10, %v2333_v4  ;;  %v1271_v59 = vmul.f32 %v2519_v10, %v2519_v10 }
 0x287   :  { %v2521_v33 = vpop.f32.mrf.mxu0  ;;  %v2523_v52 = vpop.f32.mrf.mxu1 }
 0x288   :  { %2971 = vst [vmem:[#allocation14_spill] sm:$0xff] %v2521_v33  ;;  %v1236_v25 = vmul.f32 %v2521_v33, %v2352_v54  ;;  %v1276_v0 = vmul.f32 %v2521_v33, %v2521_v33  ;;  %v2581_v30 = vmul.f32 %v2523_v52, %v2355_v44  ;;  %v1277_v56 = vmul.f32 %v2523_v52, %v2523_v52 }
 0x289   :  { %2972 = vst [vmem:[#allocation15_spill] sm:$0xff] %v2523_v52 }
 0x28c   :  { %v2525_v15 = vpop.f32.mrf.mxu2  ;;  %v2527_v6 = vpop.f32.mrf.mxu3 }
 0x28d   :  { %2973 = vst [vmem:[#allocation16_spill] sm:$0xff] %v2525_v15  ;;  %v1274_v16 = vmul.f32 %v2525_v15, %v2525_v15 }
 0x28f   :  { %v2529_v38 = vpop.f32.mrf.mxu0  ;;  %v2531_v55 = vpop.f32.mrf.mxu1 }
 0x290   :  { %v1280_v7 = vmul.f32 %v2529_v38, %v2529_v38  ;;  %v1281_v42 = vmul.f32 %v2531_v55, %v2531_v55  ;;  %v1240_v61 = vmul.f32 %v2529_v38, %v2385_v50  ;;  %v1241_v19 = vmul.f32 %v2531_v55, %v2389_v48 }
 0x292   :  { %v1288_v60 = vadd.f32 %v1280_v7, %v1272_v20  ;;  %v1289_v32 = vadd.f32 %v1281_v42, %v1273_v35 }
 0x294   :  { %v2533_v57 = vpop.f32.mrf.mxu2  ;;  %v2535_v36 = vpop.f32.mrf.mxu3 }
 0x295   :  { %v1238_v7 = vmul.f32 %v2533_v57, %v2373_v29  ;;  %v1278_v20 = vmul.f32 %v2533_v57, %v2533_v57  ;;  %v1239_v35 = vmul.f32 %v2535_v36, %v2377_v26  ;;  %v1279_v44 = vmul.f32 %v2535_v36, %v2535_v36 }
 0x297   :  { %v2537_v17 = vpop.f32.mrf.mxu0  ;;  %v2539_v51 = vpop.f32.mrf.mxu1  ;;  %v1247_v15 = vadd.f32 %v1239_v35, %v1231_v22  ;;  %v1287_v54 = vadd.f32 %v1279_v44, %v1271_v59 }
 0x298   :  { %2974 = vst [vmem:[#allocation18_spill] sm:$0xff] %v2537_v17  ;;  %v1284_v53 = vmul.f32 %v2537_v17, %v2537_v17 }
 0x299   :  { %2975 = vst [vmem:[#allocation29_spill] sm:$0xff] %v2539_v51 }
 0x29c   :  { %v2543_v12 = vpop.f32.mrf.mxu2  ;;  %v2551_v28 = vpop.f32.mrf.mxu3 }
 0x29d   :  { %2976 = vst [vmem:[#allocation30_spill] sm:$0xff] %v2543_v12  ;;  %v1282_v18 = vmul.f32 %v2543_v12, %v2543_v12  ;;  %v2639_v44 = vmul.f32 %v2551_v28, %v2551_v28 }
 0x29e   :  { %2977 = vst [vmem:[#allocation31_spill] sm:$0xff] %v2551_v28 }
 0x29f   :  { %v2561_v5 = vpop.f32.mrf.mxu0  ;;  %v2569_v27 = vpop.f32.mrf.mxu1  ;;  %2978 = vst [vmem:[#allocation32_spill] sm:$0xff] %v2639_v44 }
 0x2a0   :  { %v1296_v3 = vmul.f32 %v2561_v5, %v2561_v5  ;;  %v1297_v34 = vmul.f32 %v2569_v27, %v2569_v27  ;;  %v1256_v58 = vmul.f32 %v2561_v5, %v2452_v14  ;;  %v1257_v52 = vmul.f32 %v2569_v27, %v2455_v45 }
 0x2a2   :  { %v1304_v1 = vadd.f32 %v1296_v3, %v1288_v60  ;;  %v1305_v42 = vadd.f32 %v1297_v34, %v1289_v32  ;;  %v1248_v3 = vadd.f32 %v1240_v61, %v1232_v13  ;;  %v1244_v34 = vmul.f32 %v2537_v17, %v2416_v41 }
 0x2a3   :  { %v1249_v13 = vadd.f32 %v1241_v19, %v1233_v39  ;;  %v1246_v61 = vadd.f32 %v1238_v7, %v1230_v62  ;;  %v2625_v17 = vmul.f32 %v2539_v51, %v2419_v2  ;;  %v2635_v7 = vadd.f32 %v1282_v18, %v1274_v16 }
 0x2a4   :  { %v2597_v60 = vadd.f32 1e-06, %v1304_v1  ;;  %v2603_v23 = vadd.f32 1e-06, %v1305_v42  ;;  %v2605_v32 = vpop.f32.mrf.mxu2  ;;  %v1285_v1 = vmul.f32 %v2539_v51, %v2539_v51  ;;  %v1286_v42 = vadd.f32 %v1278_v20, %v1270_v37  ;;  %v2621_v41 = vpop.f32.mrf.mxu3 }
 0x2a5   :  { %v2617_v31 = vadd.f32 %v1256_v58, %v1248_v3  ;;  %v1294_v21 = vmul.f32 %v2605_v32, %v2605_v32  ;;  %v2627_v39 = vadd.f32 %v1257_v52, %v1249_v13  ;;  %v1295_v62 = vmul.f32 %v2621_v41, %v2621_v41 }
 0x2a6   :  { %1635 = vrcp.f32 %v2597_v60  ;;  %v2631_v19 = vadd.f32 %v1244_v34, %v1236_v25  ;;  %v1292_v37 = vadd.f32 %v1284_v53, %v1276_v0  ;;  %v2633_v58 = vadd.f32 %v1285_v1, %v1277_v56 }
 0x2a7   :  { %1637 = vrcp.f32 %v2603_v23  ;;  %v1302_v22 = vadd.f32 %v1294_v21, %v1286_v42  ;;  %v1373_v59 = vand.u32 2147483647, %v2597_v60  ;;  %v1303_v20 = vadd.f32 %v1295_v62, %v1287_v54  ;;  %v2653_v56 = vpop.f32.mrf.mxu0 }
 0x2a8   :  { %v1320_v35 = vmul.f32 0.8, %v2617_v31  ;;  %v1254_v25 = vmul.f32 %v2605_v32, %v2442_v24  ;;  %v1255_v53 = vmul.f32 %v2621_v41, %v2445_v43  ;;  %vm1369_vm6 = vweird.f32 %v2597_v60 }
 0x2a9   :  { %v2645_v3 = vadd.f32 1e-06, %v1302_v22  ;;  %v1375_v0 = vand.u32 2147483648, %v2597_v60  ;;  %v1321_v54 = vmul.f32 0.8, %v2627_v39  ;;  %vm1384_vm2 = vweird.f32 %v2603_v23 }
 0x2aa   :  { %v1388_v34 = vand.u32 2147483647, %v2603_v23  ;;  %vm2659_vm1 = vcmp.eq.f32.partialorder %v1373_v59, 8.507059e+37  ;;  %v1390_v42 = vand.u32 2147483648, %v2603_v23  ;;  %v2664_v62 = vadd.f32 1e-06, %v1303_v20 }
 0x2ab   :  { %1639 = vrcp.f32 %v2645_v3  ;;  %vm1312_vm8 = vcmp.ge.f32.partialorder %v2617_v31, 0.0  ;;  %v2667_v2 = vadd.f32 %v1254_v25, %v1246_v61  ;;  %v2669_v51 = vadd.f32 %v1255_v53, %v1247_v15 }
 0x2ac   :  { %v1636_v52 = vpop.eup %1635  ;;  %v1300_v28 = vmul.f32 %v2653_v56, %v2653_v56  ;;  %vm1313_vm4 = vcmp.ge.f32.partialorder %v2627_v39, 0.0  ;;  %v1343_v59 = vand.u32 2147483647, %v2645_v3  ;;  %1641 = vrcp.f32 %v2664_v62 }
 0x2ad   :  { %v1638_v21 = vpop.eup %1637  ;;  %v1365_v18 = vmul.f32 %v1636_v52, %v2597_v60  ;;  %vm1370_vm0 = vweird.f32 %v1636_v52  ;;  %v1376_v20 = vor.u32 1.1754944e-38, %v1375_v0  ;;  %vm2677_vm12 = vcmp.eq.f32.partialorder %v1388_v34, 8.507059e+37 }
 0x2ae   :  { %v1380_v16 = vmul.f32 %v1638_v21, %v2603_v23  ;;  %vm1385_vm9 = vweird.f32 %v1638_v21  ;;  %v1391_v25 = vor.u32 1.1754944e-38, %v1390_v42  ;;  %v1308_v53 = vadd.f32 %v1300_v28, %v1292_v37  ;;  %vm1371_vm7 = vmor %vm1369_vm6, %vm1370_vm0 }
 0x2af   :  { %v1366_v1 = vsub.f32 1.0, %v1365_v18  ;;  %v1318_v44 = vmul.f32 0.8, %v2667_v2  ;;  %vm1339_vm14 = vweird.f32 %v2645_v3  ;;  %v2686_v0 = vmul.f32 0.8, %v2669_v51  ;;  %vm1386_vm15 = vmor %vm1384_vm2, %vm1385_vm9 }
 0x2b0   :  { %v1381_v22 = vsub.f32 1.0, %v1380_v16  ;;  %v1345_v16 = vand.u32 2147483648, %v2645_v3  ;;  %vm2691_vm3 = vcmp.eq.f32.partialorder %v1343_v59, 8.507059e+37  ;;  %v1260_v60 = vmul.f32 %v2653_v56, %v2488_v9 }
 0x2b1   :  { %v1367_v12 = vmul.f32 %v1636_v52, %v1366_v1  ;;  %v1640_v1 = vpop.eup %1639  ;;  %v1358_v26 = vand.u32 2147483647, %v2664_v62  ;;  %vm1310_vm10 = vcmp.ge.f32.partialorder %v2667_v2, 0.0  ;;  %vm1311_vm13 = vcmp.ge.f32.partialorder %v2669_v51, 0.0 }
 0x2b2   :  { %v1382_v18 = vmul.f32 %v1638_v21, %v1381_v22  ;;  %v1346_v42 = vor.u32 1.1754944e-38, %v1345_v16  ;;  %v1642_v23 = vpop.eup %1641  ;;  %vm1340_vm5 = vweird.f32 %v1640_v1  ;;  %vm1354_vm6 = vweird.f32 %v2664_v62 }
 0x2b3   :  { %v1368_v61 = vadd.f32 %v1636_v52, %v1367_v12  ;;  %v1335_v12 = vmul.f32 %v1640_v1, %v2645_v3  ;;  %v1350_v13 = vmul.f32 %v1642_v23, %v2664_v62  ;;  %vm1341_vm11 = vmor %vm1339_vm14, %vm1340_vm5  ;;  %vm1355_vm2 = vweird.f32 %v1642_v23 }
 0x2b4   :  { %v1383_v33 = vadd.f32 %v1638_v21, %v1382_v18  ;;  %v2699_v18 = vadd.f32 1e-06, %v1308_v53  ;;  %v1253_v51 = vadd.f32 %v2625_v17, %v2581_v30 }
 0x2b5   :  { %v1372_v22 = vsel %vm1371_vm7, %v1636_v52, %v1368_v61  ;;  %v2701_v52 = vpop.f32.mrf.mxu1  ;;  %v1336_v43 = vsub.f32 1.0, %v1335_v12 }
 0x2b6   :  { %v1377_v37 = vsel %vm2659_vm1, %v1376_v20, %v1372_v22  ;;  %v1387_v34 = vsel %vm1386_vm15, %v1638_v21, %v1383_v33  ;;  %v1360_v33 = vand.u32 2147483648, %v2664_v62  ;;  %1643 = vrcp.f32 %v2699_v18  ;;  %v2751_v62 = vpop.f32.mrf.mxu2 }
 0x2b7   :  { %v1378_v61 = vmul.f32 %v1377_v37, %v1320_v35  ;;  %v1392_v59 = vsel %vm2677_vm12, %v1391_v25, %v1387_v34  ;;  %v1337_v20 = vmul.f32 %v1640_v1, %v1336_v43  ;;  %v1301_v35 = vmul.f32 %v2701_v52, %v2701_v52 }
 0x2b8   :  { %v1393_v4 = vmul.f32 %v1392_v59, %v1321_v54  ;;  %vm1359_vm1 = vcmp.eq.f32.partialorder %v1358_v26, 8.507059e+37 }
 0x2b9   :  { %v1456_v21 = vsel %vm1312_vm8, 0.0, %v1378_v61  ;;  %v1338_v43 = vadd.f32 %v1640_v1, %v1337_v20  ;;  %v1309_v3 = vadd.f32 %v1301_v35, %v2633_v58  ;;  %vm1356_vm8 = vmor %vm1354_vm6, %vm1355_vm2  ;;  %v1275_v35 = vmul.f32 %v2527_v6, %v2527_v6 }
 0x2ba   :  { %v1464_v16 = vmul.f32 %v1456_v21, %v2513_v49  ;;  %v1488_v54 = vmul.f32 %v1456_v21, %v2529_v38  ;;  %v1513_v15 = vmul.f32 %v1456_v21, %v2561_v5  ;;  %v1457_v25 = vsel %vm1313_vm4, 0.0, %v1393_v4 }
 0x2bb   :  { %v1465_v53 = vmul.f32 %v1457_v25, %v2515_v63  ;;  %v1489_v22 = vmul.f32 %v1457_v25, %v2531_v55  ;;  %v1514_v31 = vmul.f32 %v1457_v25, %v2569_v27  ;;  %v1351_v38 = vsub.f32 1.0, %v1350_v13 }
 0x2bc   :  { %v1472_v12 = vsub.f32 %v2317_v40, %v1464_v16  ;;  %v1496_v37 = vsub.f32 %v2385_v50, %v1488_v54  ;;  %v1521_v49 = vsub.f32 %v2452_v14, %v1513_v15  ;;  %v1342_v4 = vsel %vm1341_vm11, %v1640_v1, %v1338_v43  ;;  %v1644_v55 = vpop.eup %1643  ;;  %v2773_v15 = vpop.f32.mrf.mxu3 }
 0x2bd   :  { %v1473_v5 = vsub.f32 %v2321_v47, %v1465_v53  ;;  %v2731_v63 = vadd.f32 %v1260_v60, %v2631_v19  ;;  %v1497_v40 = vsub.f32 %v2389_v48, %v1489_v22  ;;  %v1347_v50 = vsel %vm2691_vm3, %v1346_v42, %v1342_v4  ;;  %v2985_v53 = vld [vmem:[#allocation24_spill] sm:$0xff] }
 0x2be   :  { %1480 = vst [vmem:[#allocation8 + $0x10] sm:$0xff] %v1472_v12  ;;  %v1352_v14 = vmul.f32 %v1642_v23, %v1351_v38  ;;  %v1522_v47 = vsub.f32 %v2455_v45, %v1514_v31  ;;  %v1348_v27 = vmul.f32 %v1347_v50, %v1318_v44  ;;  %v1425_v39 = vmul.f32 %v1644_v55, %v2699_v18  ;;  %v2986_v22 = vld [vmem:[#allocation20_spill] sm:$0xff] }
 0x2bf   :  { %1505 = vst [vmem:[#allocation8 + $0x50] sm:$0xff] %v1496_v37  ;;  %v1361_v1 = vor.u32 1.1754944e-38, %v1360_v33  ;;  %v1433_v60 = vand.u32 2147483647, %v2699_v18  ;;  %v1435_v45 = vand.u32 2147483648, %v2699_v18  ;;  %vm1430_vm0 = vweird.f32 %v1644_v55  ;;  %v2987_v31 = vld [vmem:[#allocation12_spill] sm:$0xff] }
 0x2c0   :  { %1530 = vst [vmem:[#allocation8 + $0x90] sm:$0xff] %v1521_v49  ;;  %v1353_v19 = vadd.f32 %v1642_v23, %v1352_v14  ;;  %v1454_v48 = vsel %vm1310_vm10, 0.0, %v1348_v27  ;;  %v1426_v28 = vsub.f32 1.0, %v1425_v39  ;;  %v2745_v44 = vadd.f32 1e-06, %v1309_v3  ;;  %v2988_v12 = vld [vmem:[#allocation32_spill] sm:$0xff] }
 0x2c1   :  { %1481 = vst [vmem:[#allocation8 + $0x18] sm:$0xff] %v1473_v5  ;;  %v1462_v58 = vmul.f32 %v1454_v48, %v2517_v8  ;;  %v1486_v26 = vmul.f32 %v1454_v48, %v2533_v57  ;;  %v1511_v34 = vmul.f32 %v1454_v48, %v2605_v32  ;;  %v1324_v57 = vmul.f32 0.8, %v2731_v63  ;;  %v2989_v5 = vld [vmem:[#allocation14_spill] sm:$0xff]  ;;  %v2991_v27 = vld [vmem:[#allocation27_spill] sm:$0xff] }
 0x2c2   :  { %1506 = vst [vmem:[#allocation8 + $0x58] sm:$0xff] %v1497_v40  ;;  %v1357_v42 = vsel %vm1356_vm8, %v1642_v23, %v1353_v19  ;;  %v1427_v2 = vmul.f32 %v1644_v55, %v1426_v28  ;;  %1645 = vrcp.f32 %v2745_v44  ;;  %vm1429_vm4 = vweird.f32 %v2699_v18  ;;  %v2992_v3 = vld [vmem:[#allocation22_spill] sm:$0xff] }
 0x2c3   :  { %1531 = vst [vmem:[#allocation8 + $0x98] sm:$0xff] %v1522_v47  ;;  %v1362_v61 = vsel %vm1359_vm1, %v1361_v1, %v1357_v42  ;;  %v1470_v59 = vsub.f32 %v2329_v46, %v1462_v58  ;;  %v1494_v13 = vsub.f32 %v2373_v29, %v1486_v26  ;;  %v1519_v33 = vsub.f32 %v2442_v24, %v1511_v34  ;;  %vm1431_vm9 = vmor %vm1429_vm4, %vm1430_vm0  ;;  %v2993_v58 = vld [vmem:[#allocation17_spill] sm:$0xff]  ;;  %v2994_v26 = vld [vmem:[#allocation30_spill] sm:$0xff] }
 0x2c4   :  { %v1363_v8 = vmul.f32 %v1362_v61, %v2686_v0  ;;  %v1428_v32 = vadd.f32 %v1644_v55, %v1427_v2  ;;  %v1261_v23 = vmul.f32 %v2701_v52, %v2491_v11  ;;  %vm1434_vm12 = vcmp.eq.f32.partialorder %v1433_v60, 8.507059e+37 }
 0x2c5   :  { %1478 = vst [vmem:[#allocation8] sm:$0xff] %v1470_v59  ;;  %v1436_v46 = vor.u32 1.1754944e-38, %v1435_v45  ;;  %v1298_v29 = vmul.f32 %v2751_v62, %v2751_v62  ;;  %v1291_v37 = vadd.f32 %v2988_v12, %v1275_v35  ;;  %vm1316_vm7 = vcmp.ge.f32.partialorder %v2731_v63, 0.0  ;;  %v2995_v59 = vld [vmem:[#allocation25_spill] sm:$0xff]  ;;  %v3001_v35 = vld [vmem:[#allocation15_spill] sm:$0xff] }
 0x2c6   :  { %v1455_v21 = vsel %vm1311_vm13, 0.0, %v1363_v8  ;;  %1503 = vst [vmem:[#allocation8 + $0x40] sm:$0xff] %v1494_v13  ;;  %v1432_v20 = vsel %vm1431_vm9, %v1644_v55, %v1428_v32  ;;  %v1269_v49 = vadd.f32 %v1261_v23, %v1253_v51  ;;  %v1299_v38 = vmul.f32 %v2773_v15, %v2773_v15  ;;  %v2990_v55 = vld [vmem:[#allocation18_spill] sm:$0xff]  ;;  %v2996_v13 = vld [vmem:[#allocation16_spill] sm:$0xff]  ;;  %v2997_v8 = vld [vmem:[#allocation19_spill] sm:$0xff] }
 0x2c7   :  { %v1463_v24 = vmul.f32 %v1455_v21, %v2519_v10  ;;  %v1487_v0 = vmul.f32 %v1455_v21, %v2535_v36  ;;  %v1512_v18 = vmul.f32 %v1455_v21, %v2621_v41  ;;  %1528 = vst [vmem:[#allocation8 + $0x80] sm:$0xff] %v1519_v33  ;;  %v1437_v16 = vsel %vm1434_vm12, %v1436_v46, %v1432_v20  ;;  %v2998_v23 = vld [vmem:[#allocation26_spill] sm:$0xff]  ;;  %v3004_v12 = vld [vmem:[#allocation23_spill] sm:$0xff] }
 0x2c8   :  { %v1306_v54 = vadd.f32 %v1298_v29, %v2635_v7  ;;  %v1646_v25 = vpop.eup %1645  ;;  %v1438_v43 = vmul.f32 %v1437_v16, %v1324_v57  ;;  %v1448_v63 = vand.u32 2147483647, %v2745_v44  ;;  %v1450_v47 = vand.u32 2147483648, %v2745_v44  ;;  %v2999_v29 = vld [vmem:[#allocation21_spill] sm:$0xff] }
 0x2c9   :  { %v1471_v10 = vsub.f32 %v2985_v53, %v1463_v24  ;;  %v1495_v36 = vsub.f32 %v2986_v22, %v1487_v0  ;;  %v1520_v41 = vsub.f32 %v2987_v31, %v1512_v18  ;;  %v1440_v17 = vmul.f32 %v1646_v25, %v2745_v44  ;;  %v3000_v24 = vld [vmem:[#allocation31_spill] sm:$0xff]  ;;  %v3002_v16 = vld [vmem:[#allocation29_spill] sm:$0xff] }
 0x2ca   :  { %v1460_v30 = vsel %vm1316_vm7, 0.0, %v1438_v43  ;;  %v2781_v7 = vadd.f32 1e-06, %v1306_v54  ;;  %vm1445_vm14 = vweird.f32 %v1646_v25  ;;  %v1307_v48 = vadd.f32 %v1299_v38, %v1291_v37 }
 0x2cb   :  { %1479 = vst [vmem:[#allocation8 + $0x8] sm:$0xff] %v1471_v10  ;;  %v1468_v4 = vmul.f32 %v1460_v30, %v2989_v5  ;;  %v1492_v40 = vmul.f32 %v1460_v30, %v2990_v55  ;;  %v1517_v50 = vmul.f32 %v1460_v30, %v2653_v56  ;;  %v1441_v14 = vsub.f32 1.0, %v1440_v17  ;;  %v3005_v30 = vld [vmem:[#allocation13_spill] sm:$0xff] }
 0x2cc   :  { %1504 = vst [vmem:[#allocation8 + $0x48] sm:$0xff] %v1495_v36  ;;  %1647 = vrcp.f32 %v2781_v7  ;;  %vm1444_vm15 = vweird.f32 %v2745_v44  ;;  %v1451_v56 = vor.u32 1.1754944e-38, %v1450_v47  ;;  %v2795_v45 = vadd.f32 1e-06, %v1307_v48 }
 0x2cd   :  { %1529 = vst [vmem:[#allocation8 + $0x88] sm:$0xff] %v1520_v41  ;;  %v1476_v39 = vsub.f32 %v2991_v27, %v1468_v4  ;;  %v1500_v19 = vsub.f32 %v2992_v3, %v1492_v40  ;;  %v1525_v1 = vsub.f32 %v2488_v9, %v1517_v50  ;;  %v1442_v60 = vmul.f32 %v1646_v25, %v1441_v14  ;;  %vm1446_vm3 = vmor %vm1444_vm15, %vm1445_vm14  ;;  %v3003_v41 = vld [vmem:[#allocation28_spill] sm:$0xff] }
 0x2ce   :  { %v1242_v34 = vmul.f32 %v2994_v26, %v2993_v58  ;;  %v1325_v42 = vmul.f32 0.8, %v1269_v49  ;;  %vm1449_vm10 = vcmp.eq.f32.partialorder %v1448_v63, 8.507059e+37  ;;  %1649 = vrcp.f32 %v2795_v45 }
 0x2cf   :  { %1484 = vst [vmem:[#allocation8 + $0x30] sm:$0xff] %v1476_v39  ;;  %v1443_v28 = vadd.f32 %v1646_v25, %v1442_v60  ;;  %v1234_v33 = vmul.f32 %v2996_v13, %v2995_v59  ;;  %v1258_v57 = vmul.f32 %v2751_v62, %v2997_v8  ;;  %v1235_v21 = vmul.f32 %v2527_v6, %v2998_v23 }
 0x2d0   :  { %1509 = vst [vmem:[#allocation8 + $0x70] sm:$0xff] %v1500_v19  ;;  %vm1317_vm5 = vcmp.ge.f32.partialorder %v1269_v49, 0.0  ;;  %v1243_v0 = vmul.f32 %v3000_v24, %v2999_v29  ;;  %v1405_v53 = vand.u32 2147483648, %v2781_v7  ;;  %v1403_v36 = vand.u32 2147483647, %v2781_v7 }
 0x2d1   :  { %1534 = vst [vmem:[#allocation8 + $0xb0] sm:$0xff] %v1525_v1  ;;  %v1447_v61 = vsel %vm1446_vm3, %v1646_v25, %v1443_v28  ;;  %v1250_v46 = vadd.f32 %v1242_v34, %v1234_v33  ;;  %v1259_v49 = vmul.f32 %v2773_v15, %v3005_v30  ;;  %vm1399_vm13 = vweird.f32 %v2781_v7 }
 0x2d2   :  { %v1648_v2 = vpop.eup %1647  ;;  %v1452_v9 = vsel %vm1449_vm10, %v1451_v56, %v1447_v61  ;;  %v1251_v5 = vadd.f32 %v1243_v0, %v1235_v21  ;;  %v1406_v4 = vor.u32 1.1754944e-38, %v1405_v53  ;;  %vm1404_vm2 = vcmp.eq.f32.partialorder %v1403_v36, 8.507059e+37 }
 0x2d3   :  { %v1453_v44 = vmul.f32 %v1452_v9, %v1325_v42  ;;  %v1395_v32 = vmul.f32 %v1648_v2, %v2781_v7  ;;  %v1266_v10 = vadd.f32 %v1258_v57, %v1250_v46  ;;  %vm1400_vm11 = vweird.f32 %v1648_v2 }
 0x2d4   :  { %v1650_v31 = vpop.eup %1649  ;;  %vm1401_vm6 = vmor %vm1399_vm13, %vm1400_vm11  ;;  %v1420_v63 = vand.u32 2147483648, %v2795_v45  ;;  %v1418_v7 = vand.u32 2147483647, %v2795_v45  ;;  %vm1414_vm0 = vweird.f32 %v2795_v45 }
 0x2d5   :  { %v1461_v18 = vsel %vm1317_vm5, 0.0, %v1453_v44  ;;  %v1396_v20 = vsub.f32 1.0, %v1395_v32  ;;  %v1322_v55 = vmul.f32 0.8, %v1266_v10  ;;  %vm1415_vm1 = vweird.f32 %v1650_v31 }
 0x2d6   :  { %v1469_v51 = vmul.f32 %v1461_v18, %v3001_v35  ;;  %v1493_v54 = vmul.f32 %v1461_v18, %v3002_v16  ;;  %v1518_v25 = vmul.f32 %v1461_v18, %v2701_v52  ;;  %v1410_v52 = vmul.f32 %v1650_v31, %v2795_v45  ;;  %vm1416_vm4 = vmor %vm1414_vm0, %vm1415_vm1 }
 0x2d7   :  { %v1397_v22 = vmul.f32 %v1648_v2, %v1396_v20  ;;  %vm1314_vm8 = vcmp.ge.f32.partialorder %v1266_v10, 0.0  ;;  %v1421_v48 = vor.u32 1.1754944e-38, %v1420_v63  ;;  %vm1419_vm9 = vcmp.eq.f32.partialorder %v1418_v7, 8.507059e+37 }
 0x2d8   :  { %v1477_v43 = vsub.f32 %v3003_v41, %v1469_v51  ;;  %v1501_v37 = vsub.f32 %v3004_v12, %v1493_v54  ;;  %v1526_v17 = vsub.f32 %v2491_v11, %v1518_v25  ;;  %v1411_v50 = vsub.f32 1.0, %v1410_v52 }
 0x2d9   :  { %v1398_v38 = vadd.f32 %v1648_v2, %v1397_v22  ;;  %v1267_v11 = vadd.f32 %v1259_v49, %v1251_v5 }
 0x2da   :  { %1485 = vst [vmem:[#allocation8 + $0x38] sm:$0xff] %v1477_v43  ;;  %v1412_v27 = vmul.f32 %v1650_v31, %v1411_v50 }
 0x2db   :  { %1510 = vst [vmem:[#allocation8 + $0x78] sm:$0xff] %v1501_v37  ;;  %v1402_v40 = vsel %vm1401_vm6, %v1648_v2, %v1398_v38  ;;  %v1323_v28 = vmul.f32 0.8, %v1267_v11  ;;  %vm1315_vm12 = vcmp.ge.f32.partialorder %v1267_v11, 0.0 }
 0x2dc   :  { %1535 = vst [vmem:[#allocation8 + $0xb8] sm:$0xff] %v1526_v17  ;;  %v1407_v14 = vsel %vm1404_vm2, %v1406_v4, %v1402_v40  ;;  %v1413_v3 = vadd.f32 %v1650_v31, %v1412_v27 }
 0x2dd   :  { %v1408_v47 = vmul.f32 %v1407_v14, %v1322_v55 }
 0x2de   :  { %v1417_v56 = vsel %vm1416_vm4, %v1650_v31, %v1413_v3 }
 0x2df   :  { %v1458_v39 = vsel %vm1314_vm8, 0.0, %v1408_v47  ;;  %v1422_v2 = vsel %vm1419_vm9, %v1421_v48, %v1417_v56 }
 0x2e0   :  { %v1466_v19 = vmul.f32 %v1458_v39, %v2996_v13  ;;  %v1490_v1 = vmul.f32 %v1458_v39, %v2994_v26  ;;  %v1515_v60 = vmul.f32 %v1458_v39, %v2751_v62  ;;  %v1423_v9 = vmul.f32 %v1422_v2, %v1323_v28 }
 0x2e2   :  { %v1474_v34 = vsub.f32 %v2995_v59, %v1466_v19  ;;  %v1498_v42 = vsub.f32 %v2993_v58, %v1490_v1  ;;  %v1523_v61 = vsub.f32 %v2997_v8, %v1515_v60  ;;  %v1459_v45 = vsel %vm1315_vm12, 0.0, %v1423_v9 }
 0x2e3   :  { %v1467_v62 = vmul.f32 %v1459_v45, %v2527_v6  ;;  %v1491_v26 = vmul.f32 %v1459_v45, %v3000_v24  ;;  %v1516_v13 = vmul.f32 %v1459_v45, %v2773_v15 }
 0x2e4   :  { %1482 = vst [vmem:[#allocation8 + $0x20] sm:$0xff] %v1474_v34 }
 0x2e5   :  { %1507 = vst [vmem:[#allocation8 + $0x60] sm:$0xff] %v1498_v42  ;;  %v1475_v58 = vsub.f32 %v2998_v23, %v1467_v62  ;;  %v1499_v59 = vsub.f32 %v2999_v29, %v1491_v26  ;;  %v1524_v33 = vsub.f32 %v3005_v30, %v1516_v13 }
 0x2e6   :  { %1532 = vst [vmem:[#allocation8 + $0xa0] sm:$0xff] %v1523_v61 }
 0x2e7   :  { %1483 = vst [vmem:[#allocation8 + $0x28] sm:$0xff] %v1475_v58 }
 0x2e8   :  { %1508 = vst [vmem:[#allocation8 + $0x68] sm:$0xff] %v1499_v59 }
 0x2e9   :  { %1533 = vst [vmem:[#allocation8 + $0xa8] sm:$0xff] %v1524_v33 }
 0x2ea   :  { %1548 = dma.vmem_to_hbm [thread:$0]  %s1541_s5, 3072, %s1543_s20, [#allocation4], %s1759_s21, %s1759_s21, %s1760_s22  }
 0x2eb   :  { %1751 = dma.done.wait [#allocation4], 3072  }
 0x2ec   :  { %1752 = vsyncadd [#allocation4], 4294964224 }
 0x2ed   :  { %1553 = vsyncpa [#allocation3], 1 }
 0x2ee   :  { %1554 = vsyncpa [#allocation6], 1 }
 0x2ef   :  { %1555 = vsyncpa [#allocation4], 1 }

</bundles_post_ra>
